<compile_context>
chip_gen: v7x
topology: tpu7x:2x2x1
jax: 0.10.0
libtpu: 0.0.40
codegen_flags: <defaults>
</compile_context>

<pallas_src>
import math

import jax
import jax.numpy as jnp
from jax import lax
from jax.experimental import pallas as pl
from jax.experimental.pallas import tpu as pltpu

# ----------------------- tiny nanoGPT config -----------------------
VOCAB = 64
N_EMBD = 32
N_HEAD = 2
N_LAYER = 2
BLOCK_SIZE = 8            # max sequence length
HEAD_DIM = N_EMBD // N_HEAD
LN_EPS = 1e-5
NEG_INF = -1e9            # f32 path; for a bf16 path switch to where-masking
LANES = 128

# Packing below assumes these toy sizes line up with the 128-lane vreg width.
assert 4 * N_EMBD == LANES and 2 * VOCAB == LANES and N_LAYER == 2

# ---------------- weight-slab row layout (all rows are 128 lanes, f32) -------
QP_R0 = 0                               # per layer: [attn_w (C,3C) | proj_w (C,C)]
FC_R0 = QP_R0 + N_LAYER * N_EMBD        # 64  : per layer fc_w (C,4C)
MT_R0 = FC_R0 + N_LAYER * N_EMBD        # 128 : per layer mlp_w^T (C,4C)
HEAD_R0 = MT_R0 + N_LAYER * N_EMBD      # 192 : [wte^T | wte^T] (C,128)
WPE_R0 = HEAD_R0 + N_EMBD               # 224 : wpe (T,C) in cols 0:C
LN_ROW = WPE_R0 + BLOCK_SIZE            # 232 : per layer [ln1_g|ln1_b|ln2_g|ln2_b]
AB_ROW = LN_ROW + N_LAYER               # 234 : per layer [attn_b (3C) | proj_b (C)]
FCB_ROW = AB_ROW + N_LAYER              # 236 : per layer fc_b (4C)
MISC_ROW = FCB_ROW + N_LAYER            # 238 : [mlp_b0 | mlp_b1 | lnf_g | lnf_b]
W_ROWS = 240                            # padded to a multiple of 8 sublanes

IBUF_MASK_COL = 64                      # attention_mask rows live at cols 64:64+T

_VMEM = pl.BlockSpec(memory_space=pltpu.MemorySpace.VMEM)


# --------------------------- in-kernel math --------------------------
def _layer_norm(x, g, b):
    mean = jnp.mean(x, axis=-1, keepdims=True)
    var = jnp.mean(jnp.square(x - mean), axis=-1, keepdims=True)
    return (x - mean) * lax.rsqrt(var + LN_EPS) * g + b


def _gelu(x):
    # nanoGPT "new_gelu" (tanh approximation, same as GPT-2)
    c = math.sqrt(2.0 / math.pi)
    return 0.5 * x * (1.0 + jnp.tanh(c * (x + 0.044715 * x * x * x)))


# ------------------------- fused forward kernel -----------------------
def _make_fused_kernel(B, T):
    """Whole nanoGPT forward as a single kernel; everything stays in VMEM."""
    BT = B * T
    C = N_EMBD
    Dh = HEAD_DIM

    def kernel(i_ref, w_ref, o_ref):
        # ---- token embedding: one-hot against the lane-dense [wte^T|wte^T] slab.
        # ids < VOCAB, so lanes >= VOCAB never match; contraction over all 128
        # lanes still selects exactly wte[id].
        ids = i_ref[:, 0:1]                                         # (BT,1) i32
        lane_iota = lax.broadcasted_iota(jnp.int32, (BT, LANES), 1)
        onehot = (lane_iota == ids).astype(jnp.float32)             # (BT,128)
        w_head = w_ref[HEAD_R0:HEAD_R0 + C, :]                      # (C,128)
        tok = lax.dot_general(onehot, w_head, (((1,), (1,)), ((), ())),
                              preferred_element_type=jnp.float32)   # (BT,C)

        pos = w_ref[WPE_R0:WPE_R0 + T, 0:C]                         # (T,C)
        x = (tok.reshape(B, T, C) + pos[None]).reshape(BT, C)       # broadcast add

        # ---- additive attention bias (causal AND key-padding), built once ----
        qi = lax.broadcasted_iota(jnp.int32, (T, T), 0)
        ki = lax.broadcasted_iota(jnp.int32, (T, T), 1)
        causal = ki <= qi                                           # (T,T)
        keep = i_ref[0:B, IBUF_MASK_COL:IBUF_MASK_COL + T] > 0      # (B,T)
        allowed = jnp.logical_and(causal[None], keep[:, None, :])   # (B,T,T)
        bias = jnp.where(allowed, 0.0, NEG_INF).astype(jnp.float32)

        # ---- transformer blocks (statically unrolled; residuals fused) ----
        for l in range(N_LAYER):
            g1 = w_ref[LN_ROW + l:LN_ROW + l + 1, 0:C]
            b1 = w_ref[LN_ROW + l:LN_ROW + l + 1, C:2 * C]
            g2 = w_ref[LN_ROW + l:LN_ROW + l + 1, 2 * C:3 * C]
            b2 = w_ref[LN_ROW + l:LN_ROW + l + 1, 3 * C:4 * C]

            # --- attention: full-128-lane RHS; Wq/q-bias already carry 1/sqrt(Dh)
            h = _layer_norm(x, g1, b1)
            qp = w_ref[QP_R0 + l * C:QP_R0 + (l + 1) * C, :]        # [Wqkv|Wproj]
            qkv = (jnp.dot(h, qp, preferred_element_type=jnp.float32)
                   + w_ref[AB_ROW + l:AB_ROW + l + 1, :])           # (BT,128)

            attn_out = None
            for hd in range(N_HEAD):
                c0 = hd * Dh
                q = qkv[:, c0:c0 + Dh].reshape(B, T, Dh)
                k = qkv[:, C + c0:C + c0 + Dh].reshape(B, T, Dh)
                v = qkv[:, 2 * C + c0:2 * C + c0 + Dh].reshape(B, T, Dh)
                s = jnp.einsum('bqd,bkd->bqk', q, k,
                               preferred_element_type=jnp.float32) + bias
                s = s - jnp.max(s, axis=-1, keepdims=True)
                p = jnp.exp(s)
                p = p * pl.reciprocal(jnp.sum(p, axis=-1, keepdims=True),
                                      approx=True)
                o_h = jnp.einsum('bqk,bkd->bqd', p, v,
                                 preferred_element_type=jnp.float32
                                 ).reshape(BT, Dh)
                # per-head slice of proj_w: accumulate projection, no concatenate
                pw = w_ref[QP_R0 + l * C + c0:QP_R0 + l * C + c0 + Dh,
                           3 * C:4 * C]                             # (Dh,C)
                contrib = jnp.dot(o_h, pw, preferred_element_type=jnp.float32)
                attn_out = contrib if attn_out is None else attn_out + contrib

            x = x + attn_out + w_ref[AB_ROW + l:AB_ROW + l + 1, 3 * C:4 * C]

            # --- MLP: LN -> fc (128-lane RHS) + GELU -> NT proj + residual ---
            h2 = _layer_norm(x, g2, b2)
            fc = (jnp.dot(h2, w_ref[FC_R0 + l * C:FC_R0 + (l + 1) * C, :],
                          preferred_element_type=jnp.float32)
                  + w_ref[FCB_ROW + l:FCB_ROW + l + 1, :])
            fc = _gelu(fc)                                          # (BT,4C)
            mlp = lax.dot_general(fc,
                                  w_ref[MT_R0 + l * C:MT_R0 + (l + 1) * C, :],
                                  (((1,), (1,)), ((), ())),
                                  preferred_element_type=jnp.float32)  # (BT,C)
            x = x + mlp + w_ref[MISC_ROW:MISC_ROW + 1, l * C:(l + 1) * C]

        # ---- final LN + tied LM head; packed head gives a dense (BT,128) store
        # (logits duplicated in both 64-lane halves; host slices [:, :VOCAB]) ----
        xf = _layer_norm(x,
                         w_ref[MISC_ROW:MISC_ROW + 1, 2 * C:3 * C],
                         w_ref[MISC_ROW:MISC_ROW + 1, 3 * C:4 * C])
        o_ref[...] = jnp.dot(xf, w_head, preferred_element_type=jnp.float32)

    return kernel


# ------------------------------ host wrapper ------------------------------
@jax.jit
def nanogpt_forward(wslab, input_ids, attention_mask):
    """Equivalent of Wrapper.forward(input_ids, attention_mask) -> (B,T,VOCAB)."""
    B, T = input_ids.shape
    BT = B * T

    # Single lane-dense int32 buffer: ids in column 0, mask rows at cols 64:64+T.
    ibuf = jnp.zeros((BT, LANES), jnp.int32)
    ibuf = ibuf.at[:, 0].set(input_ids.reshape(BT).astype(jnp.int32))
    ibuf = ibuf.at[:B, IBUF_MASK_COL:IBUF_MASK_COL + T].set(
        attention_mask.astype(jnp.int32))

    out = pl.pallas_call(
        _make_fused_kernel(B, T),
        out_shape=jax.ShapeDtypeStruct((BT, LANES), jnp.float32),
        in_specs=[_VMEM, _VMEM],
        out_specs=_VMEM,
    )(ibuf, wslab)
    # TODO(synk): at real model sizes, add a (batch*heads) grid with
    # dimension_semantics=("parallel",) so work shards across v7x's 2 TCs, and
    # re-derive the VMEM budget against 64 MiB with double-buffering.
    return out[:, :VOCAB].reshape(B, T, VOCAB)


# ------------------------- model parameters -------------------------
def init_params(key):
    keys = iter(jax.random.split(key, 24))

    def nrm(shape, std=0.02):
        return jax.random.normal(next(keys), shape, jnp.float32) * std

    L, C = N_LAYER, N_EMBD
    return {
        "wte": nrm((VOCAB, C)),
        "wpe": nrm((BLOCK_SIZE, C)),
        "ln_f_g": 1.0 + nrm((1, C)),
        "ln_f_b": nrm((1, C)),
        "ln1_g": 1.0 + nrm((L, 1, C)),
        "ln1_b": nrm((L, 1, C)),
        "attn_w": nrm((L, C, 3 * C)),
        "attn_b": nrm((L, 1, 3 * C)),
        "proj_w": nrm((L, C, C)),
        "proj_b": nrm((L, 1, C)),
        "ln2_g": 1.0 + nrm((L, 1, C)),
        "ln2_b": nrm((L, 1, C)),
        "fc_w": nrm((L, C, 4 * C)),
        "fc_b": nrm((L, 1, 4 * C)),
        "mlp_w": nrm((L, 4 * C, C)),
        "mlp_b": nrm((L, 1, C)),
    }


def pack_params(p):
    """Pack all weights into one lane-dense (W_ROWS, 128) f32 slab (done once)."""
    C = N_EMBD
    scale = 1.0 / math.sqrt(HEAD_DIM)
    qscale = jnp.concatenate([jnp.full((C,), scale, jnp.float32),
                              jnp.ones((2 * C,), jnp.float32)])     # scale Wq/bq only
    W = jnp.zeros((W_ROWS, LANES), jnp.float32)
    for l in range(N_LAYER):
        aw = p["attn_w"][l] * qscale[None, :]                       # (C,3C)
        ab = p["attn_b"][l, 0] * qscale                             # (3C,)
        W = W.at[QP_R0 + l * C:QP_R0 + (l + 1) * C, 0:3 * C].set(aw)
        W = W.at[QP_R0 + l * C:QP_R0 + (l + 1) * C, 3 * C:4 * C].set(p["proj_w"][l])
        W = W.at[FC_R0 + l * C:FC_R0 + (l + 1) * C, :].set(p["fc_w"][l])
        W = W.at[MT_R0 + l * C:MT_R0 + (l + 1) * C, :].set(p["mlp_w"][l].T)
        W = W.at[LN_ROW + l, 0:C].set(p["ln1_g"][l, 0])
        W = W.at[LN_ROW + l, C:2 * C].set(p["ln1_b"][l, 0])
        W = W.at[LN_ROW + l, 2 * C:3 * C].set(p["ln2_g"][l, 0])
        W = W.at[LN_ROW + l, 3 * C:4 * C].set(p["ln2_b"][l, 0])
        W = W.at[AB_ROW + l, 0:3 * C].set(ab)
        W = W.at[AB_ROW + l, 3 * C:4 * C].set(p["proj_b"][l, 0])
        W = W.at[FCB_ROW + l, :].set(p["fc_b"][l, 0])
        W = W.at[MISC_ROW, l * C:(l + 1) * C].set(p["mlp_b"][l, 0])
    wteT = p["wte"].T                                               # (C,VOCAB)
    W = W.at[HEAD_R0:HEAD_R0 + C, 0:VOCAB].set(wteT)
    W = W.at[HEAD_R0:HEAD_R0 + C, VOCAB:2 * VOCAB].set(wteT)        # duplicate -> dense head
    W = W.at[WPE_R0:WPE_R0 + BLOCK_SIZE, 0:C].set(p["wpe"])
    W = W.at[MISC_ROW, 2 * C:3 * C].set(p["ln_f_g"][0])
    W = W.at[MISC_ROW, 3 * C:4 * C].set(p["ln_f_b"][0])
    return W


# ------------------------- pure-JAX reference ------------------------
def nanogpt_reference(params, input_ids, attention_mask):
    B, T = input_ids.shape
    x = jnp.take(params["wte"], input_ids, axis=0) + params["wpe"][:T][None]

    causal = jnp.tril(jnp.ones((T, T), jnp.float32))
    keep = attention_mask.astype(jnp.float32)
    bias = (1.0 - causal[None] * keep[:, None, :]) * NEG_INF          # (B,T,T)

    def ln(x, g, b):
        mean = x.mean(-1, keepdims=True)
        var = ((x - mean) ** 2).mean(-1, keepdims=True)
        return (x - mean) * lax.rsqrt(var + LN_EPS) * g + b

    for l in range(N_LAYER):
        h = ln(x, params["ln1_g"][l, 0], params["ln1_b"][l, 0])
        qkv = h @ params["attn_w"][l] + params["attn_b"][l, 0]
        q, k, v = jnp.split(qkv, 3, axis=-1)
        q = q.reshape(B, T, N_HEAD, HEAD_DIM).transpose(0, 2, 1, 3)
        k = k.reshape(B, T, N_HEAD, HEAD_DIM).transpose(0, 2, 1, 3)
        v = v.reshape(B, T, N_HEAD, HEAD_DIM).transpose(0, 2, 1, 3)
        s = jnp.einsum("bhqd,bhkd->bhqk", q, k) / math.sqrt(HEAD_DIM)
        s = s + bias[:, None]
        s = s - s.max(-1, keepdims=True)
        p = jnp.exp(s)
        p = p / p.sum(-1, keepdims=True)
        att = (jnp.einsum("bhqk,bhkd->bhqd", p, v)
               .transpose(0, 2, 1, 3).reshape(B, T, N_EMBD))
        x = x + att @ params["proj_w"][l] + params["proj_b"][l, 0]
        h2 = ln(x, params["ln2_g"][l, 0], params["ln2_b"][l, 0])
        h2 = h2 @ params["fc_w"][l] + params["fc_b"][l, 0]
        h2 = 0.5 * h2 * (1.0 + jnp.tanh(math.sqrt(2.0 / math.pi)
                                        * (h2 + 0.044715 * h2 ** 3)))
        x = x + h2 @ params["mlp_w"][l] + params["mlp_b"][l, 0]

    x = ln(x, params["ln_f_g"][0], params["ln_f_b"][0])
    return x @ params["wte"].T


# -------------------------------- main -------------------------------
if __name__ == "__main__":
    root = jax.random.PRNGKey(0)
    k_params, k_ids = jax.random.split(root)

    params = init_params(k_params)
    wslab = pack_params(params)        # one-time host-side packing

    B, T = 2, BLOCK_SIZE
    input_ids = jax.random.randint(k_ids, (B, T), 0, VOCAB, dtype=jnp.int32)
    # second sequence has 2 padding positions at the end
    attention_mask = jnp.ones((B, T), dtype=jnp.int32).at[1, 6:].set(0)

    logits = nanogpt_forward(wslab, input_ids, attention_mask)
    logits = jax.block_until_ready(logits)

    assert logits.shape == (B, T, VOCAB)
    assert bool(jnp.all(jnp.isfinite(logits)))

    ref = nanogpt_reference(params, input_ids, attention_mask)
    max_err = float(jnp.max(jnp.abs(logits - ref)))
    assert bool(jnp.allclose(logits, ref, atol=2e-3, rtol=2e-3)), max_err

    print("KERNEL_OK")
</pallas_src>

<mosaic_0001>
module attributes {stable_mosaic.version = 11 : i64} {
  func.func @kernel(%arg0: memref<16x128xi32, #tpu.memory_space<vmem>>, %arg1: memref<240x128xf32, #tpu.memory_space<vmem>>, %arg2: memref<16x128xf32, #tpu.memory_space<vmem>>) attributes {dimension_semantics = [], scalar_prefetch = 0 : i64, scratch_operands = 0 : i64, tpu.core_type = #tpu.core_type<tc>} {
    %c0 = arith.constant 0 : index
    %c0_0 = arith.constant 0 : index
    %0 = vector.load %arg0[%c0, %c0_0] : memref<16x128xi32, #tpu.memory_space<vmem>>, vector<16x1xi32>
    %1 = tpu.iota {dimensions = array<i32: 1>} : vector<16x128xi32>
    %2 = vector.broadcast %0 : vector<16x1xi32> to vector<16x128xi32>
    %3 = arith.cmpi eq, %1, %2 : vector<16x128xi32>
    %4 = arith.extui %3 : vector<16x128xi1> to vector<16x128xi32>
    %5 = arith.sitofp %4 : vector<16x128xi32> to vector<16x128xf32>
    %c192 = arith.constant 192 : index
    %c0_1 = arith.constant 0 : index
    %6 = vector.load %arg1[%c192, %c0_1] : memref<240x128xf32, #tpu.memory_space<vmem>>, vector<32x128xf32>
    %cst = arith.constant dense<0.000000e+00> : vector<16x32xf32>
    %7 = tpu.matmul %5, %6, %cst {dimension_numbers = #tpu.dot_dimension_numbers<[1], [1], [0], [0], [0, 0, 1, 0], [], []>} : vector<16x128xf32>, vector<32x128xf32>, vector<16x32xf32> -> vector<16x32xf32>
    %c224 = arith.constant 224 : index
    %c0_2 = arith.constant 0 : index
    %8 = vector.load %arg1[%c224, %c0_2] : memref<240x128xf32, #tpu.memory_space<vmem>>, vector<8x32xf32>
    %9 = vector.shape_cast %7 : vector<16x32xf32> to vector<2x8x32xf32>
    %10 = vector.shape_cast %8 : vector<8x32xf32> to vector<1x8x32xf32>
    %11 = vector.broadcast %10 : vector<1x8x32xf32> to vector<2x8x32xf32>
    %12 = arith.addf %9, %11 : vector<2x8x32xf32>
    %13 = vector.shape_cast %12 : vector<2x8x32xf32> to vector<16x32xf32>
    %14 = tpu.iota {dimensions = array<i32: 0>} : vector<8x8xi32>
    %15 = tpu.iota {dimensions = array<i32: 1>} : vector<8x8xi32>
    %16 = arith.cmpi sle, %15, %14 : vector<8x8xi32>
    %c0_3 = arith.constant 0 : index
    %c64 = arith.constant 64 : index
    %17 = vector.load %arg0[%c0_3, %c64] : memref<16x128xi32, #tpu.memory_space<vmem>>, vector<2x8xi32>
    %c0_i32 = arith.constant 0 : i32
    %18 = vector.broadcast %c0_i32 : i32 to vector<2x8xi32>
    %19 = arith.cmpi sgt, %17, %18 : vector<2x8xi32>
    %20 = vector.shape_cast %16 : vector<8x8xi1> to vector<1x8x8xi1>
    %21 = vector.shape_cast %19 : vector<2x8xi1> to vector<2x1x8xi1>
    %22 = vector.broadcast %20 : vector<1x8x8xi1> to vector<2x8x8xi1>
    %23 = vector.broadcast %21 : vector<2x1x8xi1> to vector<2x8x8xi1>
    %24 = arith.andi %22, %23 : vector<2x8x8xi1>
    %cst_4 = arith.constant 0.000000e+00 : f32
    %cst_5 = arith.constant -1.000000e+09 : f32
    %25 = vector.broadcast %cst_4 : f32 to vector<2x8x8xf32>
    %26 = vector.broadcast %cst_5 : f32 to vector<2x8x8xf32>
    %27 = arith.select %24, %25, %26 : vector<2x8x8xi1>, vector<2x8x8xf32>
    %c232 = arith.constant 232 : index
    %c0_6 = arith.constant 0 : index
    %28 = vector.load %arg1[%c232, %c0_6] : memref<240x128xf32, #tpu.memory_space<vmem>>, vector<1x32xf32>
    %c232_7 = arith.constant 232 : index
    %c32 = arith.constant 32 : index
    %29 = vector.load %arg1[%c232_7, %c32] : memref<240x128xf32, #tpu.memory_space<vmem>>, vector<1x32xf32>
    %c232_8 = arith.constant 232 : index
    %c64_9 = arith.constant 64 : index
    %30 = vector.load %arg1[%c232_8, %c64_9] : memref<240x128xf32, #tpu.memory_space<vmem>>, vector<1x32xf32>
    %c232_10 = arith.constant 232 : index
    %c96 = arith.constant 96 : index
    %31 = vector.load %arg1[%c232_10, %c96] : memref<240x128xf32, #tpu.memory_space<vmem>>, vector<1x32xf32>
    %cst_11 = arith.constant dense<0.000000e+00> : vector<16xf32>
    %32 = vector.multi_reduction <add>, %13, %cst_11 [1] : vector<16x32xf32> to vector<16xf32>
    %33 = vector.shape_cast %32 : vector<16xf32> to vector<16x1xf32>
    %cst_12 = arith.constant 3.200000e+01 : f32
    %34 = vector.broadcast %cst_12 : f32 to vector<16x1xf32>
    %35 = arith.divf %33, %34 : vector<16x1xf32>
    %36 = vector.broadcast %35 : vector<16x1xf32> to vector<16x32xf32>
    %37 = arith.subf %13, %36 : vector<16x32xf32>
    %38 = arith.mulf %37, %37 : vector<16x32xf32>
    %cst_13 = arith.constant dense<0.000000e+00> : vector<16xf32>
    %39 = vector.multi_reduction <add>, %38, %cst_13 [1] : vector<16x32xf32> to vector<16xf32>
    %40 = vector.shape_cast %39 : vector<16xf32> to vector<16x1xf32>
    %cst_14 = arith.constant 3.200000e+01 : f32
    %41 = vector.broadcast %cst_14 : f32 to vector<16x1xf32>
    %42 = arith.divf %40, %41 : vector<16x1xf32>
    %43 = vector.broadcast %35 : vector<16x1xf32> to vector<16x32xf32>
    %44 = arith.subf %13, %43 : vector<16x32xf32>
    %cst_15 = arith.constant 9.99999974E-6 : f32
    %45 = vector.broadcast %cst_15 : f32 to vector<16x1xf32>
    %46 = arith.addf %42, %45 : vector<16x1xf32>
    %47 = math.rsqrt %46 : vector<16x1xf32>
    %48 = vector.broadcast %47 : vector<16x1xf32> to vector<16x32xf32>
    %49 = arith.mulf %44, %48 : vector<16x32xf32>
    %50 = vector.broadcast %28 : vector<1x32xf32> to vector<16x32xf32>
    %51 = arith.mulf %49, %50 : vector<16x32xf32>
    %52 = vector.broadcast %29 : vector<1x32xf32> to vector<16x32xf32>
    %53 = arith.addf %51, %52 : vector<16x32xf32>
    %c0_16 = arith.constant 0 : index
    %c0_17 = arith.constant 0 : index
    %54 = vector.load %arg1[%c0_16, %c0_17] : memref<240x128xf32, #tpu.memory_space<vmem>>, vector<32x128xf32>
    %cst_18 = arith.constant dense<0.000000e+00> : vector<16x128xf32>
    %55 = tpu.matmul %53, %54, %cst_18 {dimension_numbers = #tpu.dot_dimension_numbers<[1], [0], [0], [1], [0, 0, 1, 1], [], []>} : vector<16x32xf32>, vector<32x128xf32>, vector<16x128xf32> -> vector<16x128xf32>
    %c234 = arith.constant 234 : index
    %c0_19 = arith.constant 0 : index
    %56 = vector.load %arg1[%c234, %c0_19] : memref<240x128xf32, #tpu.memory_space<vmem>>, vector<1x128xf32>
    %57 = vector.broadcast %56 : vector<1x128xf32> to vector<16x128xf32>
    %58 = arith.addf %55, %57 : vector<16x128xf32>
    %59 = vector.extract_strided_slice %58 {offsets = [0, 0], sizes = [16, 16], strides = [1, 1]} : vector<16x128xf32> to vector<16x16xf32>
    %60 = vector.shape_cast %59 : vector<16x16xf32> to vector<2x8x16xf32>
    %61 = vector.extract_strided_slice %58 {offsets = [0, 32], sizes = [16, 16], strides = [1, 1]} : vector<16x128xf32> to vector<16x16xf32>
    %62 = vector.shape_cast %61 : vector<16x16xf32> to vector<2x8x16xf32>
    %63 = vector.extract_strided_slice %58 {offsets = [0, 64], sizes = [16, 16], strides = [1, 1]} : vector<16x128xf32> to vector<16x16xf32>
    %64 = vector.shape_cast %63 : vector<16x16xf32> to vector<2x8x16xf32>
    "tpu.trace_start"() <{level = 10 : i32, message = "bqd,bkd->bqk"}> : () -> ()
    %cst_20 = arith.constant dense<0.000000e+00> : vector<2x8x8xf32>
    %65 = tpu.matmul %60, %62, %cst_20 {dimension_numbers = #tpu.dot_dimension_numbers<[2], [2], [1], [1], [0, 0, 0, 1, 1, 1], [0], [0]>} : vector<2x8x16xf32>, vector<2x8x16xf32>, vector<2x8x8xf32> -> vector<2x8x8xf32>
    "tpu.trace_stop"() : () -> ()
    %66 = arith.addf %65, %27 : vector<2x8x8xf32>
    %cst_21 = arith.constant dense<0xFF800000> : vector<2x8xf32>
    %67 = vector.multi_reduction <maximumf>, %66, %cst_21 [2] : vector<2x8x8xf32> to vector<2x8xf32>
    %68 = vector.shape_cast %67 : vector<2x8xf32> to vector<2x8x1xf32>
    %69 = vector.broadcast %68 : vector<2x8x1xf32> to vector<2x8x8xf32>
    %70 = arith.subf %66, %69 : vector<2x8x8xf32>
    %71 = math.exp %70 : vector<2x8x8xf32>
    %cst_22 = arith.constant dense<0.000000e+00> : vector<2x8xf32>
    %72 = vector.multi_reduction <add>, %71, %cst_22 [2] : vector<2x8x8xf32> to vector<2x8xf32>
    %73 = vector.shape_cast %72 : vector<2x8xf32> to vector<2x8x1xf32>
    %74 = tpu.reciprocal %73 {approx = true} : vector<2x8x1xf32> -> vector<2x8x1xf32>
    %75 = vector.broadcast %74 : vector<2x8x1xf32> to vector<2x8x8xf32>
    %76 = arith.mulf %71, %75 : vector<2x8x8xf32>
    "tpu.trace_start"() <{level = 10 : i32, message = "bqk,bkd->bqd"}> : () -> ()
    %cst_23 = arith.constant dense<0.000000e+00> : vector<2x8x16xf32>
    %77 = tpu.matmul %76, %64, %cst_23 {dimension_numbers = #tpu.dot_dimension_numbers<[2], [1], [1], [2], [0, 0, 0, 1, 1, 2], [0], [0]>} : vector<2x8x8xf32>, vector<2x8x16xf32>, vector<2x8x16xf32> -> vector<2x8x16xf32>
    "tpu.trace_stop"() : () -> ()
    %78 = vector.shape_cast %77 : vector<2x8x16xf32> to vector<16x16xf32>
    %c0_24 = arith.constant 0 : index
    %c96_25 = arith.constant 96 : index
    %79 = vector.load %arg1[%c0_24, %c96_25] : memref<240x128xf32, #tpu.memory_space<vmem>>, vector<16x32xf32>
    %cst_26 = arith.constant dense<0.000000e+00> : vector<16x32xf32>
    %80 = tpu.matmul %78, %79, %cst_26 {dimension_numbers = #tpu.dot_dimension_numbers<[1], [0], [0], [1], [0, 0, 1, 1], [], []>} : vector<16x16xf32>, vector<16x32xf32>, vector<16x32xf32> -> vector<16x32xf32>
    %81 = vector.extract_strided_slice %58 {offsets = [0, 16], sizes = [16, 16], strides = [1, 1]} : vector<16x128xf32> to vector<16x16xf32>
    %82 = vector.shape_cast %81 : vector<16x16xf32> to vector<2x8x16xf32>
    %83 = vector.extract_strided_slice %58 {offsets = [0, 48], sizes = [16, 16], strides = [1, 1]} : vector<16x128xf32> to vector<16x16xf32>
    %84 = vector.shape_cast %83 : vector<16x16xf32> to vector<2x8x16xf32>
    %85 = vector.extract_strided_slice %58 {offsets = [0, 80], sizes = [16, 16], strides = [1, 1]} : vector<16x128xf32> to vector<16x16xf32>
    %86 = vector.shape_cast %85 : vector<16x16xf32> to vector<2x8x16xf32>
    "tpu.trace_start"() <{level = 10 : i32, message = "bqd,bkd->bqk"}> : () -> ()
    %cst_27 = arith.constant dense<0.000000e+00> : vector<2x8x8xf32>
    %87 = tpu.matmul %82, %84, %cst_27 {dimension_numbers = #tpu.dot_dimension_numbers<[2], [2], [1], [1], [0, 0, 0, 1, 1, 1], [0], [0]>} : vector<2x8x16xf32>, vector<2x8x16xf32>, vector<2x8x8xf32> -> vector<2x8x8xf32>
    "tpu.trace_stop"() : () -> ()
    %88 = arith.addf %87, %27 : vector<2x8x8xf32>
    %cst_28 = arith.constant dense<0xFF800000> : vector<2x8xf32>
    %89 = vector.multi_reduction <maximumf>, %88, %cst_28 [2] : vector<2x8x8xf32> to vector<2x8xf32>
    %90 = vector.shape_cast %89 : vector<2x8xf32> to vector<2x8x1xf32>
    %91 = vector.broadcast %90 : vector<2x8x1xf32> to vector<2x8x8xf32>
    %92 = arith.subf %88, %91 : vector<2x8x8xf32>
    %93 = math.exp %92 : vector<2x8x8xf32>
    %cst_29 = arith.constant dense<0.000000e+00> : vector<2x8xf32>
    %94 = vector.multi_reduction <add>, %93, %cst_29 [2] : vector<2x8x8xf32> to vector<2x8xf32>
    %95 = vector.shape_cast %94 : vector<2x8xf32> to vector<2x8x1xf32>
    %96 = tpu.reciprocal %95 {approx = true} : vector<2x8x1xf32> -> vector<2x8x1xf32>
    %97 = vector.broadcast %96 : vector<2x8x1xf32> to vector<2x8x8xf32>
    %98 = arith.mulf %93, %97 : vector<2x8x8xf32>
    "tpu.trace_start"() <{level = 10 : i32, message = "bqk,bkd->bqd"}> : () -> ()
    %cst_30 = arith.constant dense<0.000000e+00> : vector<2x8x16xf32>
    %99 = tpu.matmul %98, %86, %cst_30 {dimension_numbers = #tpu.dot_dimension_numbers<[2], [1], [1], [2], [0, 0, 0, 1, 1, 2], [0], [0]>} : vector<2x8x8xf32>, vector<2x8x16xf32>, vector<2x8x16xf32> -> vector<2x8x16xf32>
    "tpu.trace_stop"() : () -> ()
    %100 = vector.shape_cast %99 : vector<2x8x16xf32> to vector<16x16xf32>
    %c16 = arith.constant 16 : index
    %c96_31 = arith.constant 96 : index
    %101 = vector.load %arg1[%c16, %c96_31] : memref<240x128xf32, #tpu.memory_space<vmem>>, vector<16x32xf32>
    %cst_32 = arith.constant dense<0.000000e+00> : vector<16x32xf32>
    %102 = tpu.matmul %100, %101, %cst_32 {dimension_numbers = #tpu.dot_dimension_numbers<[1], [0], [0], [1], [0, 0, 1, 1], [], []>} : vector<16x16xf32>, vector<16x32xf32>, vector<16x32xf32> -> vector<16x32xf32>
    %103 = arith.addf %80, %102 : vector<16x32xf32>
    %104 = arith.addf %13, %103 : vector<16x32xf32>
    %c234_33 = arith.constant 234 : index
    %c96_34 = arith.constant 96 : index
    %105 = vector.load %arg1[%c234_33, %c96_34] : memref<240x128xf32, #tpu.memory_space<vmem>>, vector<1x32xf32>
    %106 = vector.broadcast %105 : vector<1x32xf32> to vector<16x32xf32>
    %107 = arith.addf %104, %106 : vector<16x32xf32>
    %cst_35 = arith.constant dense<0.000000e+00> : vector<16xf32>
    %108 = vector.multi_reduction <add>, %107, %cst_35 [1] : vector<16x32xf32> to vector<16xf32>
    %109 = vector.shape_cast %108 : vector<16xf32> to vector<16x1xf32>
    %cst_36 = arith.constant 3.200000e+01 : f32
    %110 = vector.broadcast %cst_36 : f32 to vector<16x1xf32>
    %111 = arith.divf %109, %110 : vector<16x1xf32>
    %112 = vector.broadcast %111 : vector<16x1xf32> to vector<16x32xf32>
    %113 = arith.subf %107, %112 : vector<16x32xf32>
    %114 = arith.mulf %113, %113 : vector<16x32xf32>
    %cst_37 = arith.constant dense<0.000000e+00> : vector<16xf32>
    %115 = vector.multi_reduction <add>, %114, %cst_37 [1] : vector<16x32xf32> to vector<16xf32>
    %116 = vector.shape_cast %115 : vector<16xf32> to vector<16x1xf32>
    %cst_38 = arith.constant 3.200000e+01 : f32
    %117 = vector.broadcast %cst_38 : f32 to vector<16x1xf32>
    %118 = arith.divf %116, %117 : vector<16x1xf32>
    %119 = vector.broadcast %111 : vector<16x1xf32> to vector<16x32xf32>
    %120 = arith.subf %107, %119 : vector<16x32xf32>
    %cst_39 = arith.constant 9.99999974E-6 : f32
    %121 = vector.broadcast %cst_39 : f32 to vector<16x1xf32>
    %122 = arith.addf %118, %121 : vector<16x1xf32>
    %123 = math.rsqrt %122 : vector<16x1xf32>
    %124 = vector.broadcast %123 : vector<16x1xf32> to vector<16x32xf32>
    %125 = arith.mulf %120, %124 : vector<16x32xf32>
    %126 = vector.broadcast %30 : vector<1x32xf32> to vector<16x32xf32>
    %127 = arith.mulf %125, %126 : vector<16x32xf32>
    %128 = vector.broadcast %31 : vector<1x32xf32> to vector<16x32xf32>
    %129 = arith.addf %127, %128 : vector<16x32xf32>
    %c64_40 = arith.constant 64 : index
    %c0_41 = arith.constant 0 : index
    %130 = vector.load %arg1[%c64_40, %c0_41] : memref<240x128xf32, #tpu.memory_space<vmem>>, vector<32x128xf32>
    %cst_42 = arith.constant dense<0.000000e+00> : vector<16x128xf32>
    %131 = tpu.matmul %129, %130, %cst_42 {dimension_numbers = #tpu.dot_dimension_numbers<[1], [0], [0], [1], [0, 0, 1, 1], [], []>} : vector<16x32xf32>, vector<32x128xf32>, vector<16x128xf32> -> vector<16x128xf32>
    %c236 = arith.constant 236 : index
    %c0_43 = arith.constant 0 : index
    %132 = vector.load %arg1[%c236, %c0_43] : memref<240x128xf32, #tpu.memory_space<vmem>>, vector<1x128xf32>
    %133 = vector.broadcast %132 : vector<1x128xf32> to vector<16x128xf32>
    %134 = arith.addf %131, %133 : vector<16x128xf32>
    %cst_44 = arith.constant 5.000000e-01 : f32
    %135 = vector.broadcast %cst_44 : f32 to vector<16x128xf32>
    %136 = arith.mulf %135, %134 : vector<16x128xf32>
    %cst_45 = arith.constant 4.471500e-02 : f32
    %137 = vector.broadcast %cst_45 : f32 to vector<16x128xf32>
    %138 = arith.mulf %137, %134 : vector<16x128xf32>
    %139 = arith.mulf %138, %134 : vector<16x128xf32>
    %140 = arith.mulf %139, %134 : vector<16x128xf32>
    %141 = arith.addf %134, %140 : vector<16x128xf32>
    %cst_46 = arith.constant 0.797884583 : f32
    %142 = vector.broadcast %cst_46 : f32 to vector<16x128xf32>
    %143 = arith.mulf %142, %141 : vector<16x128xf32>
    %144 = math.tanh %143 : vector<16x128xf32>
    %cst_47 = arith.constant 1.000000e+00 : f32
    %145 = vector.broadcast %cst_47 : f32 to vector<16x128xf32>
    %146 = arith.addf %145, %144 : vector<16x128xf32>
    %147 = arith.mulf %136, %146 : vector<16x128xf32>
    %c128 = arith.constant 128 : index
    %c0_48 = arith.constant 0 : index
    %148 = vector.load %arg1[%c128, %c0_48] : memref<240x128xf32, #tpu.memory_space<vmem>>, vector<32x128xf32>
    %cst_49 = arith.constant dense<0.000000e+00> : vector<16x32xf32>
    %149 = tpu.matmul %147, %148, %cst_49 {dimension_numbers = #tpu.dot_dimension_numbers<[1], [1], [0], [0], [0, 0, 1, 0], [], []>} : vector<16x128xf32>, vector<32x128xf32>, vector<16x32xf32> -> vector<16x32xf32>
    %150 = arith.addf %107, %149 : vector<16x32xf32>
    %c238 = arith.constant 238 : index
    %c0_50 = arith.constant 0 : index
    %151 = vector.load %arg1[%c238, %c0_50] : memref<240x128xf32, #tpu.memory_space<vmem>>, vector<1x32xf32>
    %152 = vector.broadcast %151 : vector<1x32xf32> to vector<16x32xf32>
    %153 = arith.addf %150, %152 : vector<16x32xf32>
    %c233 = arith.constant 233 : index
    %c0_51 = arith.constant 0 : index
    %154 = vector.load %arg1[%c233, %c0_51] : memref<240x128xf32, #tpu.memory_space<vmem>>, vector<1x32xf32>
    %c233_52 = arith.constant 233 : index
    %c32_53 = arith.constant 32 : index
    %155 = vector.load %arg1[%c233_52, %c32_53] : memref<240x128xf32, #tpu.memory_space<vmem>>, vector<1x32xf32>
    %c233_54 = arith.constant 233 : index
    %c64_55 = arith.constant 64 : index
    %156 = vector.load %arg1[%c233_54, %c64_55] : memref<240x128xf32, #tpu.memory_space<vmem>>, vector<1x32xf32>
    %c233_56 = arith.constant 233 : index
    %c96_57 = arith.constant 96 : index
    %157 = vector.load %arg1[%c233_56, %c96_57] : memref<240x128xf32, #tpu.memory_space<vmem>>, vector<1x32xf32>
    %cst_58 = arith.constant dense<0.000000e+00> : vector<16xf32>
    %158 = vector.multi_reduction <add>, %153, %cst_58 [1] : vector<16x32xf32> to vector<16xf32>
    %159 = vector.shape_cast %158 : vector<16xf32> to vector<16x1xf32>
    %cst_59 = arith.constant 3.200000e+01 : f32
    %160 = vector.broadcast %cst_59 : f32 to vector<16x1xf32>
    %161 = arith.divf %159, %160 : vector<16x1xf32>
    %162 = vector.broadcast %161 : vector<16x1xf32> to vector<16x32xf32>
    %163 = arith.subf %153, %162 : vector<16x32xf32>
    %164 = arith.mulf %163, %163 : vector<16x32xf32>
    %cst_60 = arith.constant dense<0.000000e+00> : vector<16xf32>
    %165 = vector.multi_reduction <add>, %164, %cst_60 [1] : vector<16x32xf32> to vector<16xf32>
    %166 = vector.shape_cast %165 : vector<16xf32> to vector<16x1xf32>
    %cst_61 = arith.constant 3.200000e+01 : f32
    %167 = vector.broadcast %cst_61 : f32 to vector<16x1xf32>
    %168 = arith.divf %166, %167 : vector<16x1xf32>
    %169 = vector.broadcast %161 : vector<16x1xf32> to vector<16x32xf32>
    %170 = arith.subf %153, %169 : vector<16x32xf32>
    %cst_62 = arith.constant 9.99999974E-6 : f32
    %171 = vector.broadcast %cst_62 : f32 to vector<16x1xf32>
    %172 = arith.addf %168, %171 : vector<16x1xf32>
    %173 = math.rsqrt %172 : vector<16x1xf32>
    %174 = vector.broadcast %173 : vector<16x1xf32> to vector<16x32xf32>
    %175 = arith.mulf %170, %174 : vector<16x32xf32>
    %176 = vector.broadcast %154 : vector<1x32xf32> to vector<16x32xf32>
    %177 = arith.mulf %175, %176 : vector<16x32xf32>
    %178 = vector.broadcast %155 : vector<1x32xf32> to vector<16x32xf32>
    %179 = arith.addf %177, %178 : vector<16x32xf32>
    %c32_63 = arith.constant 32 : index
    %c0_64 = arith.constant 0 : index
    %180 = vector.load %arg1[%c32_63, %c0_64] : memref<240x128xf32, #tpu.memory_space<vmem>>, vector<32x128xf32>
    %cst_65 = arith.constant dense<0.000000e+00> : vector<16x128xf32>
    %181 = tpu.matmul %179, %180, %cst_65 {dimension_numbers = #tpu.dot_dimension_numbers<[1], [0], [0], [1], [0, 0, 1, 1], [], []>} : vector<16x32xf32>, vector<32x128xf32>, vector<16x128xf32> -> vector<16x128xf32>
    %c235 = arith.constant 235 : index
    %c0_66 = arith.constant 0 : index
    %182 = vector.load %arg1[%c235, %c0_66] : memref<240x128xf32, #tpu.memory_space<vmem>>, vector<1x128xf32>
    %183 = vector.broadcast %182 : vector<1x128xf32> to vector<16x128xf32>
    %184 = arith.addf %181, %183 : vector<16x128xf32>
    %185 = vector.extract_strided_slice %184 {offsets = [0, 0], sizes = [16, 16], strides = [1, 1]} : vector<16x128xf32> to vector<16x16xf32>
    %186 = vector.shape_cast %185 : vector<16x16xf32> to vector<2x8x16xf32>
    %187 = vector.extract_strided_slice %184 {offsets = [0, 32], sizes = [16, 16], strides = [1, 1]} : vector<16x128xf32> to vector<16x16xf32>
    %188 = vector.shape_cast %187 : vector<16x16xf32> to vector<2x8x16xf32>
    %189 = vector.extract_strided_slice %184 {offsets = [0, 64], sizes = [16, 16], strides = [1, 1]} : vector<16x128xf32> to vector<16x16xf32>
    %190 = vector.shape_cast %189 : vector<16x16xf32> to vector<2x8x16xf32>
    "tpu.trace_start"() <{level = 10 : i32, message = "bqd,bkd->bqk"}> : () -> ()
    %cst_67 = arith.constant dense<0.000000e+00> : vector<2x8x8xf32>
    %191 = tpu.matmul %186, %188, %cst_67 {dimension_numbers = #tpu.dot_dimension_numbers<[2], [2], [1], [1], [0, 0, 0, 1, 1, 1], [0], [0]>} : vector<2x8x16xf32>, vector<2x8x16xf32>, vector<2x8x8xf32> -> vector<2x8x8xf32>
    "tpu.trace_stop"() : () -> ()
    %192 = arith.addf %191, %27 : vector<2x8x8xf32>
    %cst_68 = arith.constant dense<0xFF800000> : vector<2x8xf32>
    %193 = vector.multi_reduction <maximumf>, %192, %cst_68 [2] : vector<2x8x8xf32> to vector<2x8xf32>
    %194 = vector.shape_cast %193 : vector<2x8xf32> to vector<2x8x1xf32>
    %195 = vector.broadcast %194 : vector<2x8x1xf32> to vector<2x8x8xf32>
    %196 = arith.subf %192, %195 : vector<2x8x8xf32>
    %197 = math.exp %196 : vector<2x8x8xf32>
    %cst_69 = arith.constant dense<0.000000e+00> : vector<2x8xf32>
    %198 = vector.multi_reduction <add>, %197, %cst_69 [2] : vector<2x8x8xf32> to vector<2x8xf32>
    %199 = vector.shape_cast %198 : vector<2x8xf32> to vector<2x8x1xf32>
    %200 = tpu.reciprocal %199 {approx = true} : vector<2x8x1xf32> -> vector<2x8x1xf32>
    %201 = vector.broadcast %200 : vector<2x8x1xf32> to vector<2x8x8xf32>
    %202 = arith.mulf %197, %201 : vector<2x8x8xf32>
    "tpu.trace_start"() <{level = 10 : i32, message = "bqk,bkd->bqd"}> : () -> ()
    %cst_70 = arith.constant dense<0.000000e+00> : vector<2x8x16xf32>
    %203 = tpu.matmul %202, %190, %cst_70 {dimension_numbers = #tpu.dot_dimension_numbers<[2], [1], [1], [2], [0, 0, 0, 1, 1, 2], [0], [0]>} : vector<2x8x8xf32>, vector<2x8x16xf32>, vector<2x8x16xf32> -> vector<2x8x16xf32>
    "tpu.trace_stop"() : () -> ()
    %204 = vector.shape_cast %203 : vector<2x8x16xf32> to vector<16x16xf32>
    %c32_71 = arith.constant 32 : index
    %c96_72 = arith.constant 96 : index
    %205 = vector.load %arg1[%c32_71, %c96_72] : memref<240x128xf32, #tpu.memory_space<vmem>>, vector<16x32xf32>
    %cst_73 = arith.constant dense<0.000000e+00> : vector<16x32xf32>
    %206 = tpu.matmul %204, %205, %cst_73 {dimension_numbers = #tpu.dot_dimension_numbers<[1], [0], [0], [1], [0, 0, 1, 1], [], []>} : vector<16x16xf32>, vector<16x32xf32>, vector<16x32xf32> -> vector<16x32xf32>
    %207 = vector.extract_strided_slice %184 {offsets = [0, 16], sizes = [16, 16], strides = [1, 1]} : vector<16x128xf32> to vector<16x16xf32>
    %208 = vector.shape_cast %207 : vector<16x16xf32> to vector<2x8x16xf32>
    %209 = vector.extract_strided_slice %184 {offsets = [0, 48], sizes = [16, 16], strides = [1, 1]} : vector<16x128xf32> to vector<16x16xf32>
    %210 = vector.shape_cast %209 : vector<16x16xf32> to vector<2x8x16xf32>
    %211 = vector.extract_strided_slice %184 {offsets = [0, 80], sizes = [16, 16], strides = [1, 1]} : vector<16x128xf32> to vector<16x16xf32>
    %212 = vector.shape_cast %211 : vector<16x16xf32> to vector<2x8x16xf32>
    "tpu.trace_start"() <{level = 10 : i32, message = "bqd,bkd->bqk"}> : () -> ()
    %cst_74 = arith.constant dense<0.000000e+00> : vector<2x8x8xf32>
    %213 = tpu.matmul %208, %210, %cst_74 {dimension_numbers = #tpu.dot_dimension_numbers<[2], [2], [1], [1], [0, 0, 0, 1, 1, 1], [0], [0]>} : vector<2x8x16xf32>, vector<2x8x16xf32>, vector<2x8x8xf32> -> vector<2x8x8xf32>
    "tpu.trace_stop"() : () -> ()
    %214 = arith.addf %213, %27 : vector<2x8x8xf32>
    %cst_75 = arith.constant dense<0xFF800000> : vector<2x8xf32>
    %215 = vector.multi_reduction <maximumf>, %214, %cst_75 [2] : vector<2x8x8xf32> to vector<2x8xf32>
    %216 = vector.shape_cast %215 : vector<2x8xf32> to vector<2x8x1xf32>
    %217 = vector.broadcast %216 : vector<2x8x1xf32> to vector<2x8x8xf32>
    %218 = arith.subf %214, %217 : vector<2x8x8xf32>
    %219 = math.exp %218 : vector<2x8x8xf32>
    %cst_76 = arith.constant dense<0.000000e+00> : vector<2x8xf32>
    %220 = vector.multi_reduction <add>, %219, %cst_76 [2] : vector<2x8x8xf32> to vector<2x8xf32>
    %221 = vector.shape_cast %220 : vector<2x8xf32> to vector<2x8x1xf32>
    %222 = tpu.reciprocal %221 {approx = true} : vector<2x8x1xf32> -> vector<2x8x1xf32>
    %223 = vector.broadcast %222 : vector<2x8x1xf32> to vector<2x8x8xf32>
    %224 = arith.mulf %219, %223 : vector<2x8x8xf32>
    "tpu.trace_start"() <{level = 10 : i32, message = "bqk,bkd->bqd"}> : () -> ()
    %cst_77 = arith.constant dense<0.000000e+00> : vector<2x8x16xf32>
    %225 = tpu.matmul %224, %212, %cst_77 {dimension_numbers = #tpu.dot_dimension_numbers<[2], [1], [1], [2], [0, 0, 0, 1, 1, 2], [0], [0]>} : vector<2x8x8xf32>, vector<2x8x16xf32>, vector<2x8x16xf32> -> vector<2x8x16xf32>
    "tpu.trace_stop"() : () -> ()
    %226 = vector.shape_cast %225 : vector<2x8x16xf32> to vector<16x16xf32>
    %c48 = arith.constant 48 : index
    %c96_78 = arith.constant 96 : index
    %227 = vector.load %arg1[%c48, %c96_78] : memref<240x128xf32, #tpu.memory_space<vmem>>, vector<16x32xf32>
    %cst_79 = arith.constant dense<0.000000e+00> : vector<16x32xf32>
    %228 = tpu.matmul %226, %227, %cst_79 {dimension_numbers = #tpu.dot_dimension_numbers<[1], [0], [0], [1], [0, 0, 1, 1], [], []>} : vector<16x16xf32>, vector<16x32xf32>, vector<16x32xf32> -> vector<16x32xf32>
    %229 = arith.addf %206, %228 : vector<16x32xf32>
    %230 = arith.addf %153, %229 : vector<16x32xf32>
    %c235_80 = arith.constant 235 : index
    %c96_81 = arith.constant 96 : index
    %231 = vector.load %arg1[%c235_80, %c96_81] : memref<240x128xf32, #tpu.memory_space<vmem>>, vector<1x32xf32>
    %232 = vector.broadcast %231 : vector<1x32xf32> to vector<16x32xf32>
    %233 = arith.addf %230, %232 : vector<16x32xf32>
    %cst_82 = arith.constant dense<0.000000e+00> : vector<16xf32>
    %234 = vector.multi_reduction <add>, %233, %cst_82 [1] : vector<16x32xf32> to vector<16xf32>
    %235 = vector.shape_cast %234 : vector<16xf32> to vector<16x1xf32>
    %cst_83 = arith.constant 3.200000e+01 : f32
    %236 = vector.broadcast %cst_83 : f32 to vector<16x1xf32>
    %237 = arith.divf %235, %236 : vector<16x1xf32>
    %238 = vector.broadcast %237 : vector<16x1xf32> to vector<16x32xf32>
    %239 = arith.subf %233, %238 : vector<16x32xf32>
    %240 = arith.mulf %239, %239 : vector<16x32xf32>
    %cst_84 = arith.constant dense<0.000000e+00> : vector<16xf32>
    %241 = vector.multi_reduction <add>, %240, %cst_84 [1] : vector<16x32xf32> to vector<16xf32>
    %242 = vector.shape_cast %241 : vector<16xf32> to vector<16x1xf32>
    %cst_85 = arith.constant 3.200000e+01 : f32
    %243 = vector.broadcast %cst_85 : f32 to vector<16x1xf32>
    %244 = arith.divf %242, %243 : vector<16x1xf32>
    %245 = vector.broadcast %237 : vector<16x1xf32> to vector<16x32xf32>
    %246 = arith.subf %233, %245 : vector<16x32xf32>
    %cst_86 = arith.constant 9.99999974E-6 : f32
    %247 = vector.broadcast %cst_86 : f32 to vector<16x1xf32>
    %248 = arith.addf %244, %247 : vector<16x1xf32>
    %249 = math.rsqrt %248 : vector<16x1xf32>
    %250 = vector.broadcast %249 : vector<16x1xf32> to vector<16x32xf32>
    %251 = arith.mulf %246, %250 : vector<16x32xf32>
    %252 = vector.broadcast %156 : vector<1x32xf32> to vector<16x32xf32>
    %253 = arith.mulf %251, %252 : vector<16x32xf32>
    %254 = vector.broadcast %157 : vector<1x32xf32> to vector<16x32xf32>
    %255 = arith.addf %253, %254 : vector<16x32xf32>
    %c96_87 = arith.constant 96 : index
    %c0_88 = arith.constant 0 : index
    %256 = vector.load %arg1[%c96_87, %c0_88] : memref<240x128xf32, #tpu.memory_space<vmem>>, vector<32x128xf32>
    %cst_89 = arith.constant dense<0.000000e+00> : vector<16x128xf32>
    %257 = tpu.matmul %255, %256, %cst_89 {dimension_numbers = #tpu.dot_dimension_numbers<[1], [0], [0], [1], [0, 0, 1, 1], [], []>} : vector<16x32xf32>, vector<32x128xf32>, vector<16x128xf32> -> vector<16x128xf32>
    %c237 = arith.constant 237 : index
    %c0_90 = arith.constant 0 : index
    %258 = vector.load %arg1[%c237, %c0_90] : memref<240x128xf32, #tpu.memory_space<vmem>>, vector<1x128xf32>
    %259 = vector.broadcast %258 : vector<1x128xf32> to vector<16x128xf32>
    %260 = arith.addf %257, %259 : vector<16x128xf32>
    %cst_91 = arith.constant 5.000000e-01 : f32
    %261 = vector.broadcast %cst_91 : f32 to vector<16x128xf32>
    %262 = arith.mulf %261, %260 : vector<16x128xf32>
    %cst_92 = arith.constant 4.471500e-02 : f32
    %263 = vector.broadcast %cst_92 : f32 to vector<16x128xf32>
    %264 = arith.mulf %263, %260 : vector<16x128xf32>
    %265 = arith.mulf %264, %260 : vector<16x128xf32>
    %266 = arith.mulf %265, %260 : vector<16x128xf32>
    %267 = arith.addf %260, %266 : vector<16x128xf32>
    %cst_93 = arith.constant 0.797884583 : f32
    %268 = vector.broadcast %cst_93 : f32 to vector<16x128xf32>
    %269 = arith.mulf %268, %267 : vector<16x128xf32>
    %270 = math.tanh %269 : vector<16x128xf32>
    %cst_94 = arith.constant 1.000000e+00 : f32
    %271 = vector.broadcast %cst_94 : f32 to vector<16x128xf32>
    %272 = arith.addf %271, %270 : vector<16x128xf32>
    %273 = arith.mulf %262, %272 : vector<16x128xf32>
    %c160 = arith.constant 160 : index
    %c0_95 = arith.constant 0 : index
    %274 = vector.load %arg1[%c160, %c0_95] : memref<240x128xf32, #tpu.memory_space<vmem>>, vector<32x128xf32>
    %cst_96 = arith.constant dense<0.000000e+00> : vector<16x32xf32>
    %275 = tpu.matmul %273, %274, %cst_96 {dimension_numbers = #tpu.dot_dimension_numbers<[1], [1], [0], [0], [0, 0, 1, 0], [], []>} : vector<16x128xf32>, vector<32x128xf32>, vector<16x32xf32> -> vector<16x32xf32>
    %276 = arith.addf %233, %275 : vector<16x32xf32>
    %c238_97 = arith.constant 238 : index
    %c32_98 = arith.constant 32 : index
    %277 = vector.load %arg1[%c238_97, %c32_98] : memref<240x128xf32, #tpu.memory_space<vmem>>, vector<1x32xf32>
    %278 = vector.broadcast %277 : vector<1x32xf32> to vector<16x32xf32>
    %279 = arith.addf %276, %278 : vector<16x32xf32>
    %c238_99 = arith.constant 238 : index
    %c64_100 = arith.constant 64 : index
    %280 = vector.load %arg1[%c238_99, %c64_100] : memref<240x128xf32, #tpu.memory_space<vmem>>, vector<1x32xf32>
    %c238_101 = arith.constant 238 : index
    %c96_102 = arith.constant 96 : index
    %281 = vector.load %arg1[%c238_101, %c96_102] : memref<240x128xf32, #tpu.memory_space<vmem>>, vector<1x32xf32>
    %cst_103 = arith.constant dense<0.000000e+00> : vector<16xf32>
    %282 = vector.multi_reduction <add>, %279, %cst_103 [1] : vector<16x32xf32> to vector<16xf32>
    %283 = vector.shape_cast %282 : vector<16xf32> to vector<16x1xf32>
    %cst_104 = arith.constant 3.200000e+01 : f32
    %284 = vector.broadcast %cst_104 : f32 to vector<16x1xf32>
    %285 = arith.divf %283, %284 : vector<16x1xf32>
    %286 = vector.broadcast %285 : vector<16x1xf32> to vector<16x32xf32>
    %287 = arith.subf %279, %286 : vector<16x32xf32>
    %288 = arith.mulf %287, %287 : vector<16x32xf32>
    %cst_105 = arith.constant dense<0.000000e+00> : vector<16xf32>
    %289 = vector.multi_reduction <add>, %288, %cst_105 [1] : vector<16x32xf32> to vector<16xf32>
    %290 = vector.shape_cast %289 : vector<16xf32> to vector<16x1xf32>
    %cst_106 = arith.constant 3.200000e+01 : f32
    %291 = vector.broadcast %cst_106 : f32 to vector<16x1xf32>
    %292 = arith.divf %290, %291 : vector<16x1xf32>
    %293 = vector.broadcast %285 : vector<16x1xf32> to vector<16x32xf32>
    %294 = arith.subf %279, %293 : vector<16x32xf32>
    %cst_107 = arith.constant 9.99999974E-6 : f32
    %295 = vector.broadcast %cst_107 : f32 to vector<16x1xf32>
    %296 = arith.addf %292, %295 : vector<16x1xf32>
    %297 = math.rsqrt %296 : vector<16x1xf32>
    %298 = vector.broadcast %297 : vector<16x1xf32> to vector<16x32xf32>
    %299 = arith.mulf %294, %298 : vector<16x32xf32>
    %300 = vector.broadcast %280 : vector<1x32xf32> to vector<16x32xf32>
    %301 = arith.mulf %299, %300 : vector<16x32xf32>
    %302 = vector.broadcast %281 : vector<1x32xf32> to vector<16x32xf32>
    %303 = arith.addf %301, %302 : vector<16x32xf32>
    %cst_108 = arith.constant dense<0.000000e+00> : vector<16x128xf32>
    %304 = tpu.matmul %303, %6, %cst_108 {dimension_numbers = #tpu.dot_dimension_numbers<[1], [0], [0], [1], [0, 0, 1, 1], [], []>} : vector<16x32xf32>, vector<32x128xf32>, vector<16x128xf32> -> vector<16x128xf32>
    %c0_109 = arith.constant 0 : index
    %c0_110 = arith.constant 0 : index
    %305 = vector.load %arg2[%c0_109, %c0_110] : memref<16x128xf32, #tpu.memory_space<vmem>>, vector<16x128xf32>
    tpu.vector_store %arg2[%c0_109, %c0_110], %304 {strides = array<i32>} : memref<16x128xf32, #tpu.memory_space<vmem>>, vector<16x128xf32>,
    return
  }
}

</mosaic_0001>

<bundles_post_ra>
// kernel: nanogpt_forward.1
= control target key start
LH: loop header
LB: loop body
LE: loop exit
PB: predicated region body
PF: predicated region fallthrough
CT: control target
= control target key end

     0   :  { %7 = vsyncpa [#allocation3], 0  ;;  %s3291_s9 = smov [#allocation2]   ;;  %s3695_s0 = inlined_call_operand.vmem [shape: s32[16,128], index: 0, kind: input, shape index: {}]   ;;  %s3696_s1 = inlined_call_operand.hbm [shape: f32[240,128], index: 1, kind: input, shape index: {}]   ;;  %s3697_s2 = inlined_call_operand.vmem [shape: f32[16,128], index: 2, kind: output, shape index: {}]  }
   0x1   :  { %s15_s10 = sshll.u32 %s3291_s9, 4  ;;  %s3267_s13 = scalar_lea.hbm %s3696_s1, 3840  ;;  %s16_s10 = int_to_ptr.vmem [resolvable:$true] %s15_s10 }
   0x2   :  { %p3268_p0 = scmp.ne.s32.totalorder %s3696_s1, %s3267_s13  ;;  %p3271_p1 = scmp.lt.u32.totalorder %s3267_s13, %s3696_s1 }
   0x4   :  { %p3273_p2 = pnand %p3271_p1, %p3268_p0 }
   0x6   :  { %3276 = shalt.err (!%p3273_p2)
}
   0x7   :  { %s3277_s18 = scalar_lea.vmem %s16_s10, 3840  ;;  %p3282_p4 = scmp.lt.s32.totalorder %s16_s10, %s16_s10 }
   0x8   :  { %p3278_p3 = scmp.ne.s32.totalorder %s16_s10, %s3277_s18  ;;  %p3283_p5 = scmp.lt.s32.totalorder %s3277_s18, %s3277_s18 }
   0xa   :  { %p3284_p6 = por %p3283_p5, %p3282_p4 }
   0xc   :  { %p3285_p7 = pnand %p3284_p6, %p3278_p3 }
   0xe   :  { %3288 = shalt.err (!%p3285_p7)
}
   0xf   :  { %s3292_s19 = smov 128   ;;  %s3293_s20 = smov 8  }
  0x10   :  { %21 = dma.hbm_to_vmem [thread:$0]  %s3696_s1, 3840, %s16_s10, [#allocation3], %s3292_s19, %s3292_s19, %s3293_s20  }
  0x11   :  { %3289 = dma.done.wait [#allocation3], 3840  }
  0x12   :  { %3290 = vsyncadd [#allocation3], 4294963456  ;;  %v3294_v0 = vmov 0   ;;  %v25_v1 = vld [vmem:[%s3695_s0] sm:$0xff]  ;;  %v42_v3 = vld [vmem:[#allocation2 + $0xc8] sm:$0xff]  ;;  %v27_v9 = vlaneseq  ;;  %v3295_v12 = vmov 1.0  }
  0x13   :  { %3186 = vset.pattern.permute.xlu0 %v3294_v0  ;;  %v41_v2 = vld [vmem:[#allocation2 + $0xc0] sm:$0xff]  ;;  %v43_v4 = vld [vmem:[#allocation2 + $0xd0] sm:$0xff]  ;;  %v44_v5 = vld [vmem:[#allocation2 + $0xd8] sm:$0xff]  ;;  %vm180_vm2 = vcmask 261120   ;;  %s3296_s1 = smov 96   ;;  %v3297_v53 = vmov 0.0  }
  0x14   :  { %30 = vperm.xlu0 %3186, %v25_v1   ;;  %v26_v6 = vld [vmem:[%s3695_s0 + $0x8] sm:$0xff]  ;;  %v3340_v7 = vpack.c.bf16 %v42_v3, %v41_v2  ;;  %v3342_v8 = vpack.c.bf16 %v44_v5, %v43_v4  ;;  %v3349_v10 = vand.u32 127, %v27_v9  ;;  %v120_v14 = vld [vmem:[#allocation2 + $0xe0] sm:$0xff]  ;;  %v3375_v35 = vld [vmem:[#allocation2 + $0x10] sm:$0xff]  ;;  %vm3298_vm3 = vmmov 0   ;;  %s3302_s29 = smov 80  }
  0x15   :  { %v3365_v31 = vld [vmem:[#allocation2 + $0xe8] ss:$0 sm:$0xff]  ;;  %v3369_v32 = vld [vmem:[#allocation2] sm:$0xff]  ;;  %v3377_v36 = vld [vmem:[#allocation2 + $0x18] sm:$0xff]  ;;  %v124_v55 = vshrl.u32 %v27_v9, 7  ;;  %vm313_vm9 = vcmask 130048  }
  0x16   :  { %3088 = vmatprep.subr.bf16.mxu0 %v3340_v7  ;;  %v3371_v33 = vld [vmem:[#allocation2 + $0x8] sm:$0xff]  ;;  %v3099_v37 = vpack.c.bf16 %v3377_v36, %v3375_v35  ;;  %v126_v54 = vld [vmem:[%s3695_s0] sm:$0x3]  ;;  %v3299_v57 = vmov 1966171168   ;;  %s3300_s0 = smov 64  }
  0x17   :  { %3090 = vmatpush3.bf16.xpose.msra.mxu0 %v3340_v7  ;;  %v3095_v34 = vpack.c.bf16 %v3371_v33, %v3369_v32  ;;  %v3395_v56 = vld [vmem:[#allocation2 + $0xea] ss:$0 sm:$0xff]  ;;  %vm127_vm4 = vcmp.gt.s32.totalorder %v126_v54, 0  ;;  %v130_v58 = vunpack.c.l.s4 %v3299_v57  ;;  %v159_v5 = vsub.s32 0, %v124_v55  ;;  %s3303_s30 = smov 112   ;;  %s3304_s3 = smov 48  }
  0x18   :  { %33 = vperm.xlu0 %3186, %v26_v6   ;;  %3092 = vmatprep.subr.bf16.mxu0 %v3342_v8  ;;  %v128_v63 = vsel %vm127_vm4, 1, %v3294_v0  ;;  %vm125_vm10 = vcmp.le.s32.totalorder %v3349_v10, %v124_v55  ;;  %vm465_vm15 = vcmask 64512   ;;  %s3305_s4 = smov 32  }
  0x19   :  { %3096 = vmatprep.subr.bf16.mxu1 %v3095_v34  ;;  %v131_v61 = vunpack.c.0.s8 %v130_v58 }
  0x1a   :  { %3098 = vmatpush3.bf16.msra.mxu1 %v3095_v34 }
  0x1b   :  { %3100 = vmatprep.subr.bf16.mxu1 %v3099_v37  ;;  %v134_v1 = vsub.s32 %v131_v61, %v124_v55 }
  0x1d   :  { %v135_v2 = vrot.slane %v128_v63, %v134_v1 }
  0x1e   :  { %3102 = vmatpush3.bf16.msra.mxu1 %v3099_v37 }
  0x1f   :  { %3094 = vmatpush3.bf16.xpose.msra.mxu0 %v3342_v8  ;;  %2913 = vmatprep.subr.mxu1 %v3297_v53  ;;  %v143_v4 = vrot.slane %v135_v2, %v134_v1  ;;  %v136_v6 = vcombine.high %v135_v2, %v135_v2 }
  0x20   :  { %2933 = vmatprep.subr.mxu0 %v3297_v53 }
  0x21   :  { %vm151_vm5 = vcmp.ne.s32.totalorder %v143_v4, 0  ;;  %v150_v9 = vrot.slane %v136_v6, %v134_v1 }
  0x23   :  { %vm152_vm6 = vcmp.ne.s32.totalorder %v150_v9, 0 }
  0x93   :  { %v31_v11 = vpop.permute.xlu0 %30 }
  0x94   :  { %vm35_vm0 = vcmp.eq.s32.totalorder %v3349_v10, %v31_v11  ;;  %v155_v11 = vsel %vm151_vm5, 1, %v3294_v0 }
  0x95   :  { %2899 = vmatprep.mubr.msk.f32.mxu0 %vm35_vm0, %v3295_v12 }
  0x97   :  { %v34_v13 = vpop.permute.xlu0 %33 }
  0x98   :  { %vm36_vm1 = vcmp.eq.s32.totalorder %v3349_v10, %v34_v13  ;;  %v156_v13 = vsel %vm152_vm6, 1, %v3294_v0 }
  0x99   :  { %2900 = vmatmul.mubr.msk.f32.vlgmr.msra.gmra.mrb[0].mxu0 %vm36_vm1, %v3295_v12  ;;  %v160_v12 = vrot.slane %v155_v11, %v159_v5 }
  0x9a   :  { %2935 = vmatprep.mubr.msk.f32.mxu0 %vm3298_vm3, %v3297_v53 }
  0x9b   :  { %vm165_vm7 = vcmp.eq.s32.totalorder %v160_v12, 1 }
 0x16c   :  { %v2901_v15 = vpop.f32.mrb[0].mxu0 }
 0x16d   :  { %v111_v16 = vpop.f32.mrb[1].mxu0  ;;  %v3355_v18 = vadd.f32 %v2901_v15, %v120_v14  ;;  %v167_v15 = vsel %vm165_vm7, 1, %v3294_v0 }
 0x16e   :  { %v3353_v17 = vadd.f32 %v120_v14, %v111_v16  ;;  %v164_v14 = vrot.slane %v156_v13, %v159_v5 }
 0x16f   :  { %v184_v20 = vsel %vm180_vm2, %v3355_v18, 0.0 }
 0x170   :  { %v181_v19 = vsel %vm180_vm2, %v3353_v17, 0.0  ;;  %vm166_vm8 = vcmp.eq.s32.totalorder %v164_v14, 1 }
 0x171   :  { %182 = vadd.xlane.f32.xlu1 %v181_v19  ;;  %v168_v16 = vsel %vm166_vm8, 1, %v3294_v0 }
 0x175   :  { %185 = vadd.xlane.f32.xlu1 %v184_v20 }
 0x1fe   :  { %v183_v21 = vpop.xlane.xlu1 %182 }
 0x1ff   :  { %v188_v22 = vmul.f32 0.03125, %v183_v21 }
 0x201   :  { %v190_v23 = vsub.f32 %v3353_v17, %v188_v22  ;;  %v3301_v22 = vmov -1e+09  }
 0x202   :  { %v186_v24 = vpop.xlane.xlu1 %185 }
 0x203   :  { %v189_v25 = vmul.f32 0.03125, %v186_v24  ;;  %v192_v26 = vmul.f32 %v190_v23, %v190_v23 }
 0x205   :  { %v191_v27 = vsub.f32 %v3355_v18, %v189_v25  ;;  %v194_v28 = vsel %vm180_vm2, %v192_v26, 0.0 }
 0x206   :  { %195 = vadd.xlane.f32.xlu0 %v194_v28 }
 0x207   :  { %v193_v29 = vmul.f32 %v191_v27, %v191_v27 }
 0x209   :  { %v197_v30 = vsel %vm180_vm2, %v193_v29, 0.0 }
 0x20a   :  { %198 = vadd.xlane.f32.xlu1 %v197_v30 }
 0x21b   :  { %215 = vrot.lane.b32.xlu1 %v3365_v31, %s3296_s1 }
 0x21c   :  { %171 = vrot.lane.b32.xlu0 %v168_v16, %s3300_s0 }
 0x293   :  { %v196_v38 = vpop.xlane.xlu0 %195 }
 0x294   :  { %v200_v39 = vmul.f32 0.03125, %v196_v38 }
 0x296   :  { %v202_v40 = vadd.f32 1e-05, %v200_v39 }
 0x297   :  { %v199_v41 = vpop.xlane.xlu1 %198  ;;  %v172_v21 = vpop.permute.xlu0 %171 }
 0x298   :  { %3207 = vrsqrt.f32 %v202_v40  ;;  %v201_v42 = vmul.f32 0.03125, %v199_v41  ;;  %vm174_vm13 = vcmp.ne.s32.totalorder %v172_v21, 0 }
 0x299   :  { %vm176_vm14 = vmand %vm125_vm10, %vm174_vm13 }
 0x29a   :  { %v203_v43 = vadd.f32 1e-05, %v201_v42 }
 0x29b   :  { %v216_v46 = vpop.permute.xlu1 %215 }
 0x29c   :  { %3209 = vrsqrt.f32 %v203_v43 }
 0x2a2   :  { %v3208_v44 = vpop.eup %3207 }
 0x2a3   :  { %v206_v45 = vmul.f32 %v3208_v44, %v190_v23 }
 0x2a5   :  { %v212_v47 = vmul.f32 %v3365_v31, %v206_v45 }
 0x2a6   :  { %v3210_v48 = vpop.eup %3209 }
 0x2a7   :  { %v207_v49 = vmul.f32 %v3210_v48, %v191_v27  ;;  %v218_v50 = vadd.f32 %v216_v46, %v212_v47  ;;  %v3430_v27 = vsel %vm176_vm14, 0.0, %v3301_v22 }
 0x2a9   :  { %v213_v51 = vmul.f32 %v3365_v31, %v207_v49  ;;  %2910 = vmatprep.mubr.msk.f32.mxu1 %vm180_vm2, %v218_v50 }
 0x2ab   :  { %v219_v52 = vadd.f32 %v216_v46, %v213_v51 }
 0x2ad   :  { %2911 = vmatmul.mubr.msk.f32.vlgmr.msra.gmra.mrb[0].mxu1 %vm180_vm2, %v219_v52 }
 0x2ae   :  { %2915 = vmatprep.mubr.msk.f32.mxu1 %vm3298_vm3, %v3297_v53 }
 0x380   :  { %v2912_v59 = vpop.f32.mrb[0].mxu1 }
 0x381   :  { %v301_v60 = vpop.f32.mrb[1].mxu1  ;;  %v3404_v3 = vadd.f32 %v2912_v59, %v3395_v56 }
 0x382   :  { %v3398_v62 = vadd.f32 %v3395_v56, %v301_v60 }
 0x384   :  { %311 = vrot.lane.b32.xlu1 %v3398_v62, %s3296_s1 }
 0x388   :  { %389 = vrot.lane.b32.xlu1 %v3404_v3, %s3296_s1 }
 0x38c   :  { %169 = vrot.lane.b32.xlu1 %v167_v15, %s3300_s0 }
 0x3f6   :  { %v312_v19 = vpop.permute.xlu1 %311 }
 0x3f7   :  { %2914 = vmatpush3.xpose.msk.msra.mxu1 %vm313_vm9, %v312_v19 }
 0x3f8   :  { %2918 = vmatprep.subr.mxu1 %v3297_v53 }
 0x3fa   :  { %2916 = vmatmul.mubr.msk.f32.vlgmr.msra.gmra.mrb[2].mxu1 %vm313_vm9, %v3398_v62  ;;  %v390_v20 = vpop.permute.xlu1 %389 }
 0x3fb   :  { %2919 = vmatpush3.xpose.msk.msra.mxu1 %vm313_vm9, %v390_v20  ;;  %2920 = vmatprep.mubr.msk.f32.mxu1 %vm3298_vm3, %v3297_v53 }
 0x3fc   :  { %2923 = vmatprep.subr.mxu1 %v3297_v53 }
 0x3fe   :  { %2921 = vmatmul.mubr.msk.f32.vlgmr.msra.gmra.mrb[4].mxu1 %vm313_vm9, %v3404_v3  ;;  %v170_v0 = vpop.permute.xlu1 %169 }
 0x3ff   :  { %2925 = vmatprep.mubr.msk.f32.mxu1 %vm3298_vm3, %v3297_v53  ;;  %vm173_vm11 = vcmp.ne.s32.totalorder %v170_v0, 0 }
 0x400   :  { %vm175_vm12 = vmand %vm125_vm10, %vm173_vm11 }
 0x401   :  { %v3427_v23 = vsel %vm175_vm12, 0.0, %v3301_v22 }
 0x4cd   :  { %v384_v24 = vpop.f32.mrb[2].mxu1 }
 0x4ce   :  { %v385_v25 = vadd.f32 %v384_v24, %v3427_v23  ;;  %v2917_v26 = vpop.f32.mrb[3].mxu1 }
 0x4d0   :  { %v466_v28 = vsel %vm465_vm15, %v385_v25, -inf }
 0x4d1   :  { %v461_v29 = vpop.f32.mrb[4].mxu1  ;;  %467 = vmax.xlane.f32.xlu1 %v466_v28  ;;  %v3187_v28 = vpack.i.bf16 %v3377_v36, %v3375_v35 }
 0x4d2   :  { %v462_v10 = vadd.f32 %v461_v29, %v3430_v27  ;;  %v2922_v30 = vpop.f32.mrb[5].mxu1  ;;  %v3192_v29 = vpack.i.bf16 %v3371_v33, %v3369_v32 }
 0x4d4   :  { %v469_v34 = vsel %vm465_vm15, %v462_v10, -inf }
 0x4d5   :  { %470 = vmax.xlane.f32.xlu0 %v469_v34 }
 0x4e2   :  { %488 = vrot.lane.b32.xlu1 %v3398_v62, %s3300_s0 }
 0x4e6   :  { %644 = vrot.lane.b32.xlu1 %v3398_v62, %s3302_s29 }
 0x4ea   :  { %722 = vrot.lane.b32.xlu1 %v3404_v3, %s3302_s29 }
 0x4eb   :  { %564 = vrot.lane.b32.xlu0 %v3404_v3, %s3300_s0 }
 0x4ef   :  { %720 = vrot.lane.b32.xlu0 %v3404_v3, %s3303_s30 }
 0x55e   :  { %v468_v37 = vpop.xlane.xlu1 %467 }
 0x55f   :  { %v472_v38 = vsub.f32 %v385_v25, %v468_v37 }
 0x561   :  { %v474_v39 = vmul.f32 1.442695, %v472_v38 }
 0x562   :  { %v471_v40 = vpop.xlane.xlu0 %470  ;;  %v489_v41 = vpop.permute.xlu1 %488 }
 0x563   :  { %3211 = vpow2.f32 %v474_v39  ;;  %v473_v42 = vsub.f32 %v462_v10, %v471_v40  ;;  %2924 = vmatpush3.msra.mxu1 %v489_v41 }
 0x564   :  { %2928 = vmatprep.subr.mxu1 %v3297_v53 }
 0x565   :  { %v476_v43 = vmul.f32 1.442695, %v473_v42 }
 0x566   :  { %v645_v44 = vpop.permute.xlu1 %644  ;;  %v565_v57 = vpop.permute.xlu0 %564 }
 0x567   :  { %3213 = vpow2.f32 %v476_v43  ;;  %2934 = vmatpush3.xpose.msk.msra.mxu0 %vm313_vm9, %v645_v44 }
 0x568   :  { %2943 = vmatprep.subr.mxu0 %v3297_v53 }
 0x56a   :  { %v723_v49 = vpop.permute.xlu1 %722  ;;  %v721_v60 = vpop.permute.xlu0 %720 }
 0x56d   :  { %v3212_v45 = vpop.eup %3211 }
 0x56e   :  { %v478_v46 = vsel %vm465_vm15, %v3212_v45, 0.0 }
 0x56f   :  { %479 = vadd.xlane.f32.xlu1 %v478_v46 }
 0x571   :  { %v3214_v47 = vpop.eup %3213 }
 0x572   :  { %v481_v48 = vsel %vm465_vm15, %v3214_v47, 0.0 }
 0x573   :  { %482 = vadd.xlane.f32.xlu1 %v481_v48 }
 0x584   :  { %642 = vrot.lane.b32.xlu1 %v3398_v62, %s3303_s30 }
 0x5fc   :  { %v480_v50 = vpop.xlane.xlu1 %479 }
 0x5fd   :  { %3215 = vrcp.f32 %v480_v50 }
 0x600   :  { %v483_v51 = vpop.xlane.xlu1 %482 }
 0x601   :  { %3217 = vrcp.f32 %v483_v51 }
 0x604   :  { %v643_v52 = vpop.permute.xlu1 %642 }
 0x605   :  { %2936 = vmatmul.mubr.msk.f32.vlgmr.msra.gmra.mrb[2].mxu0 %vm313_vm9, %v643_v52 }
 0x606   :  { %2945 = vmatprep.mubr.msk.f32.mxu0 %vm3298_vm3, %v3297_v53 }
 0x607   :  { %v3216_v54 = vpop.eup %3215 }
 0x608   :  { %v486_v55 = vmul.f32 %v3216_v54, %v3212_v45 }
 0x60a   :  { %2926 = vmatmul.mubr.msk.f32.vlgmr.msra.gmra.mrb[6].mxu1 %vm465_vm15, %v486_v55 }
 0x60b   :  { %v3218_v58 = vpop.eup %3217  ;;  %2929 = vmatpush3.msra.mxu1 %v565_v57  ;;  %2930 = vmatprep.mubr.msk.f32.mxu1 %vm3298_vm3, %v3297_v53 }
 0x60c   :  { %v487_v59 = vmul.f32 %v3218_v58, %v3214_v47  ;;  %2938 = vmatprep.subr.mxu1 %v3297_v53 }
 0x60e   :  { %2931 = vmatmul.mubr.msk.f32.vlgmr.msra.gmra.mrb[8].mxu1 %vm465_vm15, %v487_v59 }
 0x60f   :  { %2940 = vmatprep.mubr.msk.f32.mxu1 %vm3298_vm3, %v3297_v53 }
 0x612   :  { %2939 = vmatpush3.xpose.msk.msra.mxu1 %vm313_vm9, %v723_v49 }
 0x613   :  { %2948 = vmatprep.subr.mxu1 %v3297_v53 }
 0x615   :  { %2941 = vmatmul.mubr.msk.f32.vlgmr.msra.gmra.mrb[10].mxu1 %vm313_vm9, %v721_v60 }
 0x616   :  { %2950 = vmatprep.mubr.msk.f32.mxu1 %vm3298_vm3, %v3297_v53 }
 0x6d8   :  { %v716_v61 = vpop.f32.mrb[2].mxu0 }
 0x6d9   :  { %v717_v63 = vadd.f32 %v716_v61, %v3427_v23  ;;  %v2937_v1 = vpop.f32.mrb[3].mxu0 }
 0x6db   :  { %v798_v2 = vsel %vm465_vm15, %v717_v63, -inf }
 0x6dc   :  { %799 = vmax.xlane.f32.xlu1 %v798_v2 }
 0x6dd   :  { %v3469_v4 = vpop.f32.mrb[6].mxu1 }
 0x6de   :  { %v2927_v5 = vpop.f32.mrb[7].mxu1 }
 0x6df   :  { %v1201_v5 = vld [vmem:[#allocation2 + $0x40] sm:$0xff] }
 0x6e1   :  { %v3471_v6 = vpop.f32.mrb[8].mxu1 }
 0x6e2   :  { %v2932_v9 = vpop.f32.mrb[9].mxu1 }
 0x6e8   :  { %v794_v11 = vpop.f32.mrb[10].mxu1 }
 0x6e9   :  { %v795_v12 = vadd.f32 %v794_v11, %v3430_v27  ;;  %v2942_v13 = vpop.f32.mrb[11].mxu1  ;;  %v1203_v11 = vld [vmem:[#allocation2 + $0x50] sm:$0xff] }
 0x6eb   :  { %v801_v14 = vsel %vm465_vm15, %v795_v12, -inf }
 0x6ec   :  { %802 = vmax.xlane.f32.xlu0 %v801_v14 }
 0x769   :  { %v800_v15 = vpop.xlane.xlu1 %799 }
 0x76a   :  { %v804_v16 = vsub.f32 %v717_v63, %v800_v15 }
 0x76c   :  { %v806_v19 = vmul.f32 1.442695, %v804_v16 }
 0x76e   :  { %3219 = vpow2.f32 %v806_v19 }
 0x778   :  { %v3220_v20 = vpop.eup %3219 }
 0x779   :  { %v803_v0 = vpop.xlane.xlu0 %802  ;;  %v810_v21 = vsel %vm465_vm15, %v3220_v20, 0.0 }
 0x77a   :  { %v805_v22 = vsub.f32 %v795_v12, %v803_v0  ;;  %811 = vadd.xlane.f32.xlu0 %v810_v21  ;;  %v1204_v12 = vld [vmem:[#allocation2 + $0x58] sm:$0xff] }
 0x77b   :  { %v3115_v13 = vpack.c.bf16 %v1204_v12, %v1203_v11 }
 0x77c   :  { %v808_v24 = vmul.f32 1.442695, %v805_v22 }
 0x77e   :  { %3221 = vpow2.f32 %v808_v24 }
 0x788   :  { %v3222_v25 = vpop.eup %3221 }
 0x789   :  { %v813_v26 = vsel %vm465_vm15, %v3222_v25, 0.0 }
 0x78a   :  { %814 = vadd.xlane.f32.xlu1 %v813_v26 }
 0x790   :  { %820 = vrot.lane.b32.xlu0 %v3398_v62, %s3304_s3 }
 0x794   :  { %3193 = vrot.lane.b32.xlu0 %v3192_v29, %s3305_s4 }
 0x79b   :  { %896 = vrot.lane.b32.xlu1 %v3404_v3, %s3304_s3 }
 0x79f   :  { %3188 = vrot.lane.b32.xlu1 %v3187_v28, %s3305_s4 }
 0x7a3   :  { %1160 = vrot.lane.b32.xlu1 %v3395_v56, %s3305_s4 }
 0x807   :  { %v812_v10 = vpop.xlane.xlu0 %811 }
 0x808   :  { %3223 = vrcp.f32 %v812_v10 }
 0x80b   :  { %v821_v62 = vpop.permute.xlu0 %820 }
 0x80c   :  { %2944 = vmatpush3.msra.mxu0 %v821_v62 }
 0x80f   :  { %v3194_v37 = vpop.permute.xlu0 %3193 }
 0x810   :  { %v3196_v39 = vunpack.i.h.bf16 %v3194_v37  ;;  %v3195_v40 = vunpack.i.l.bf16 %v3194_v37 }
 0x812   :  { %v3224_v30 = vpop.eup %3223  ;;  %v3107_v42 = vpack.c.bf16 %v3196_v39, %v3195_v40 }
 0x813   :  { %v818_v3 = vmul.f32 %v3224_v30, %v3220_v20  ;;  %v1309_v30 = vld [vmem:[#allocation2 + $0x80] sm:$0xff] }
 0x815   :  { %2946 = vmatmul.mubr.msk.f32.vlgmr.msra.gmra.mrb[4].mxu0 %vm465_vm15, %v818_v3  ;;  %v1310_v3 = vld [vmem:[#allocation2 + $0x88] sm:$0xff] }
 0x817   :  { %v815_v35 = vpop.xlane.xlu1 %814 }
 0x818   :  { %3225 = vrcp.f32 %v815_v35  ;;  %v1311_v35 = vld [vmem:[#allocation2 + $0x90] sm:$0xff] }
 0x81b   :  { %v897_v36 = vpop.permute.xlu1 %896 }
 0x81c   :  { %2949 = vmatpush3.msra.mxu1 %v897_v36  ;;  %v3119_v36 = vpack.c.bf16 %v1310_v3, %v1309_v30 }
 0x81f   :  { %v3189_v34 = vpop.permute.xlu1 %3188 }
 0x820   :  { %v3191_v38 = vunpack.i.h.bf16 %v3189_v34  ;;  %v3190_v56 = vunpack.i.l.bf16 %v3189_v34  ;;  %v2764_v34 = vld [vmem:[#allocation2 + $0xec] ss:$0 sm:$0xff] }
 0x822   :  { %v3226_v32 = vpop.eup %3225  ;;  %v3103_v41 = vpack.c.bf16 %v3191_v38, %v3190_v56 }
 0x823   :  { %v819_v33 = vmul.f32 %v3226_v32, %v3222_v25  ;;  %v1161_v48 = vpop.permute.xlu1 %1160  ;;  %v1312_v32 = vld [vmem:[#allocation2 + $0x98] sm:$0xff] }
 0x824   :  { %3104 = vmatprep.subr.bf16.mxu0 %v3103_v41 }
 0x825   :  { %2951 = vmatmul.mubr.msk.f32.vlgmr.msra.gmra.mrb[12].mxu1 %vm465_vm15, %v819_v33  ;;  %3106 = vmatpush3.bf16.msra.mxu0 %v3103_v41  ;;  %v3123_v33 = vpack.c.bf16 %v1312_v32, %v1311_v35 }
 0x826   :  { %3108 = vmatprep.subr.bf16.mxu0 %v3107_v42 }
 0x8e8   :  { %v892_v43 = vpop.f32.mrb[4].mxu0 }
 0x8e9   :  { %v2947_v44 = vpop.f32.mrb[5].mxu0  ;;  %2957 = vmatprep.mubr.msk.f32.mxu0 %vm313_vm9, %v892_v43 }
 0x8f8   :  { %v968_v45 = vpop.f32.mrb[12].mxu1 }
 0x8f9   :  { %v2952_v46 = vpop.f32.mrb[13].mxu1  ;;  %2958 = vmatmul.mubr.msk.f32.vlgmr.msra.gmra.mrb[6].mxu0 %vm313_vm9, %v968_v45 }
 0x8fa   :  { %3110 = vmatpush3.bf16.msra.mxu0 %v3107_v42  ;;  %2964 = vmatprep.mubr.msk.f32.mxu0 %vm313_vm9, %v3469_v4 }
 0x8fb   :  { %3120 = vmatprep.subr.bf16.mxu0 %v3119_v36 }
 0x901   :  { %2965 = vmatmul.mubr.msk.f32.vlgmr.msra.gmra.mrb[6].mxu0 %vm313_vm9, %v3471_v6  ;;  %v1202_v6 = vld [vmem:[#allocation2 + $0x48] sm:$0xff] }
 0x902   :  { %v3111_v9 = vpack.c.bf16 %v1202_v6, %v1201_v5 }
 0x903   :  { %3122 = vmatpush3.bf16.xpose.msra.mxu0 %v3119_v36 }
 0x904   :  { %3112 = vmatprep.subr.bf16.mxu1 %v3111_v9  ;;  %3124 = vmatprep.subr.bf16.mxu0 %v3123_v33 }
 0x905   :  { %3114 = vmatpush3.bf16.msra.mxu1 %v3111_v9 }
 0x906   :  { %3116 = vmatprep.subr.bf16.mxu1 %v3115_v13 }
 0x909   :  { %3118 = vmatpush3.bf16.msra.mxu1 %v3115_v13 }
 0x90b   :  { %3126 = vmatpush3.bf16.xpose.msra.mxu0 %v3123_v33 }
 0x90c   :  { %3010 = vmatprep.subr.mxu0 %v3297_v53 }
 0x9d4   :  { %v2966_v47 = vpop.f32.mrb[6].mxu0 }
 0x9d5   :  { %v1153_v49 = vadd.f32 %v2966_v47, %v3355_v18  ;;  %v1143_v50 = vpop.f32.mrb[7].mxu0 }
 0x9d6   :  { %v1152_v51 = vadd.f32 %v1143_v50, %v3353_v17 }
 0x9d7   :  { %v3499_v52 = vadd.f32 %v1161_v48, %v1153_v49 }
 0x9d8   :  { %v3501_v54 = vadd.f32 %v1161_v48, %v1152_v51 }
 0x9d9   :  { %v1168_v55 = vsel %vm180_vm2, %v3499_v52, 0.0 }
 0x9da   :  { %1169 = vadd.xlane.f32.xlu1 %v1168_v55  ;;  %v1165_v57 = vsel %vm180_vm2, %v3501_v54, 0.0 }
 0x9db   :  { %1166 = vadd.xlane.f32.xlu0 %v1165_v57 }
 0x9eb   :  { %1191 = vrot.lane.b32.xlu1 %v3365_v31, %s3300_s0 }
 0xa67   :  { %v1170_v58 = vpop.xlane.xlu1 %1169 }
 0xa68   :  { %v1172_v18 = vmul.f32 0.03125, %v1170_v58  ;;  %v1167_v59 = vpop.xlane.xlu0 %1166 }
 0xa69   :  { %v1171_v60 = vmul.f32 0.03125, %v1167_v59 }
 0xa6a   :  { %v1174_v17 = vsub.f32 %v3499_v52, %v1172_v18 }
 0xa6b   :  { %v1173_v61 = vsub.f32 %v3501_v54, %v1171_v60 }
 0xa6c   :  { %v1176_v2 = vmul.f32 %v1174_v17, %v1174_v17 }
 0xa6d   :  { %v1175_v63 = vmul.f32 %v1173_v61, %v1173_v61 }
 0xa6e   :  { %v1180_v4 = vsel %vm180_vm2, %v1176_v2, 0.0 }
 0xa6f   :  { %v1177_v1 = vsel %vm180_vm2, %v1175_v63, 0.0 }
 0xa70   :  { %1178 = vadd.xlane.f32.xlu0 %v1177_v1 }
 0xa74   :  { %1181 = vadd.xlane.f32.xlu0 %v1180_v4 }
 0xa8a   :  { %1196 = vrot.lane.b32.xlu0 %v3365_v31, %s3305_s4  ;;  %v1192_v31 = vpop.permute.xlu1 %1191 }
 0xafd   :  { %v1179_v14 = vpop.xlane.xlu0 %1178 }
 0xafe   :  { %v1183_v15 = vmul.f32 0.03125, %v1179_v14 }
 0xb00   :  { %v1185_v16 = vadd.f32 1e-05, %v1183_v15 }
 0xb01   :  { %v1182_v19 = vpop.xlane.xlu0 %1181 }
 0xb02   :  { %3227 = vrsqrt.f32 %v1185_v16  ;;  %v1184_v20 = vmul.f32 0.03125, %v1182_v19 }
 0xb04   :  { %v1186_v0 = vadd.f32 1e-05, %v1184_v20 }
 0xb05   :  { %v1197_v24 = vpop.permute.xlu0 %1196 }
 0xb06   :  { %3229 = vrsqrt.f32 %v1186_v0  ;;  %v3538_v0 = vld [vmem:[#allocation2 + $0xe9] ss:$0 sm:$0xff] }
 0xb0c   :  { %v3228_v21 = vpop.eup %3227 }
 0xb0d   :  { %v1189_v22 = vmul.f32 %v3228_v21, %v1173_v61  ;;  %v3520_v61 = vld [vmem:[#allocation2 + $0xee] ss:$0 sm:$0xff]  ;;  %v3542_v21 = vld [vmem:[#allocation2 + $0x20] sm:$0xff] }
 0xb0f   :  { %v1194_v25 = vmul.f32 %v1192_v31, %v1189_v22 }
 0xb10   :  { %v3230_v26 = vpop.eup %3229 }
 0xb11   :  { %v1190_v28 = vmul.f32 %v3230_v26, %v1174_v17  ;;  %v1199_v29 = vadd.f32 %v1197_v24, %v1194_v25  ;;  %v3550_v25 = vld [vmem:[#allocation2 + $0x38] sm:$0xff] }
 0xb13   :  { %v1195_v10 = vmul.f32 %v1192_v31, %v1190_v28  ;;  %2975 = vmatprep.mubr.msk.f32.mxu1 %vm180_vm2, %v1199_v29  ;;  %v3544_v31 = vld [vmem:[#allocation2 + $0x28] sm:$0xff] }
 0xb14   :  { %v3127_v22 = vpack.c.bf16 %v3544_v31, %v3542_v21 }
 0xb15   :  { %v1200_v62 = vadd.f32 %v1197_v24, %v1195_v10  ;;  %v3548_v24 = vld [vmem:[#allocation2 + $0x30] sm:$0xff] }
 0xb16   :  { %3128 = vmatprep.subr.bf16.mxu1 %v3127_v22  ;;  %v3131_v26 = vpack.c.bf16 %v3550_v25, %v3548_v24 }
 0xb17   :  { %2976 = vmatmul.mubr.msk.f32.vlgmr.msra.gmra.mrb[14].mxu1 %vm180_vm2, %v1200_v62 }
 0xb18   :  { %3130 = vmatpush3.bf16.msra.mxu1 %v3127_v22 }
 0xb19   :  { %3132 = vmatprep.subr.bf16.mxu1 %v3131_v26 }
 0xb1c   :  { %3134 = vmatpush3.bf16.msra.mxu1 %v3131_v26 }
 0xb1d   :  { %3000 = vmatprep.subr.mxu1 %v3297_v53 }
 0xbea   :  { %v2977_v37 = vpop.f32.mrb[14].mxu1 }
 0xbeb   :  { %v1288_v38 = vadd.f32 %v2977_v37, %v2764_v34  ;;  %v1282_v56 = vpop.f32.mrb[15].mxu1 }
 0xbec   :  { %v1283_v39 = vadd.f32 %v2764_v34, %v1282_v56 }
 0xbed   :  { %v1294_v40 = vmul.f32 0.044715, %v1288_v38  ;;  %v1292_v18 = vmul.f32 0.5, %v1288_v38 }
 0xbee   :  { %v1293_v41 = vmul.f32 0.044715, %v1283_v39  ;;  %v1291_v57 = vmul.f32 0.5, %v1283_v39 }
 0xbef   :  { %v1296_v42 = vmul.f32 %v1294_v40, %v1288_v38  ;;  %v3561_v40 = vld [vmem:[#allocation2 + $0xeb] ss:$0 sm:$0xff] }
 0xbf0   :  { %v1295_v43 = vmul.f32 %v1293_v41, %v1283_v39 }
 0xbf1   :  { %v1298_v44 = vmul.f32 %v1296_v42, %v1288_v38 }
 0xbf2   :  { %v1297_v45 = vmul.f32 %v1295_v43, %v1283_v39 }
 0xbf3   :  { %v1300_v46 = vadd.f32 %v1298_v44, %v1288_v38 }
 0xbf4   :  { %v1299_v47 = vadd.f32 %v1297_v45, %v1283_v39 }
 0xbf5   :  { %v1302_v48 = vmul.f32 0.7978846, %v1300_v46 }
 0xbf6   :  { %v1301_v49 = vmul.f32 0.7978846, %v1299_v47 }
 0xbf7   :  { %3231 = vtanh.f32 %v1302_v48 }
 0xbf8   :  { %3233 = vtanh.f32 %v1301_v49 }
 0xc01   :  { %v3232_v50 = vpop.eup %3231 }
 0xc02   :  { %v3234_v51 = vpop.eup %3233  ;;  %v1306_v55 = vadd.f32 1.0, %v3232_v50 }
 0xc03   :  { %v1305_v58 = vadd.f32 1.0, %v3234_v51 }
 0xc04   :  { %v1308_v60 = vmul.f32 %v1306_v55, %v1292_v18 }
 0xc05   :  { %v1307_v59 = vmul.f32 %v1305_v58, %v1291_v57 }
 0xc07   :  { %2986 = vmatprep.mubr.f32.mxu0 %v1307_v59 }
 0xc08   :  { %2987 = vmatmul.mubr.f32.vlgmr.msra.gmra.mrb[8].mxu0 %v1308_v60 }
 0xc09   :  { %3012 = vmatprep.mubr.msk.f32.mxu0 %vm3298_vm3, %v3297_v53 }
 0xcdb   :  { %v2988_v17 = vpop.f32.mrb[8].mxu0 }
 0xcdc   :  { %v1389_v63 = vadd.f32 %v2988_v17, %v3499_v52  ;;  %v1379_v1 = vpop.f32.mrb[9].mxu0 }
 0xcdd   :  { %v1388_v2 = vadd.f32 %v1379_v1, %v3501_v54 }
 0xcde   :  { %v3525_v4 = vadd.f32 %v3520_v61, %v1389_v63 }
 0xcdf   :  { %v3528_v5 = vadd.f32 %v3520_v61, %v1388_v2 }
 0xce0   :  { %v1401_v6 = vsel %vm180_vm2, %v3525_v4, 0.0 }
 0xce1   :  { %1402 = vadd.xlane.f32.xlu0 %v1401_v6  ;;  %v1398_v9 = vsel %vm180_vm2, %v3528_v5, 0.0 }
 0xce2   :  { %1399 = vadd.xlane.f32.xlu1 %v1398_v9 }
 0xd6e   :  { %v1403_v11 = vpop.xlane.xlu0 %1402 }
 0xd6f   :  { %v1405_v12 = vmul.f32 0.03125, %v1403_v11  ;;  %v1400_v52 = vpop.xlane.xlu1 %1399 }
 0xd70   :  { %v1404_v13 = vmul.f32 0.03125, %v1400_v52 }
 0xd71   :  { %v1407_v54 = vsub.f32 %v3525_v4, %v1405_v12 }
 0xd72   :  { %v1406_v14 = vsub.f32 %v3528_v5, %v1404_v13 }
 0xd73   :  { %v1409_v15 = vmul.f32 %v1407_v54, %v1407_v54 }
 0xd74   :  { %v1408_v16 = vmul.f32 %v1406_v14, %v1406_v14 }
 0xd75   :  { %v1413_v19 = vsel %vm180_vm2, %v1409_v15, 0.0 }
 0xd76   :  { %1414 = vadd.xlane.f32.xlu0 %v1413_v19  ;;  %v1410_v20 = vsel %vm180_vm2, %v1408_v16, 0.0 }
 0xd77   :  { %1411 = vadd.xlane.f32.xlu1 %v1410_v20 }
 0xd88   :  { %1431 = vrot.lane.b32.xlu1 %v3538_v0, %s3296_s1 }
 0xe03   :  { %v1415_v28 = vpop.xlane.xlu0 %1414 }
 0xe04   :  { %v1417_v29 = vmul.f32 0.03125, %v1415_v28  ;;  %v1412_v10 = vpop.xlane.xlu1 %1411 }
 0xe05   :  { %v1416_v62 = vmul.f32 0.03125, %v1412_v10 }
 0xe06   :  { %v1419_v30 = vadd.f32 1e-05, %v1417_v29 }
 0xe07   :  { %v1418_v3 = vadd.f32 1e-05, %v1416_v62 }
 0xe08   :  { %3235 = vrsqrt.f32 %v1419_v30  ;;  %v1432_v37 = vpop.permute.xlu1 %1431 }
 0xe09   :  { %3237 = vrsqrt.f32 %v1418_v3 }
 0xe12   :  { %v3236_v35 = vpop.eup %3235 }
 0xe13   :  { %v3238_v36 = vpop.eup %3237  ;;  %v1423_v32 = vmul.f32 %v3236_v35, %v1407_v54 }
 0xe14   :  { %v1422_v33 = vmul.f32 %v3238_v36, %v1406_v14 }
 0xe15   :  { %v1429_v34 = vmul.f32 %v3538_v0, %v1423_v32 }
 0xe16   :  { %v1428_v38 = vmul.f32 %v3538_v0, %v1422_v33 }
 0xe17   :  { %v1435_v39 = vadd.f32 %v1432_v37, %v1429_v34 }
 0xe18   :  { %v1434_v56 = vadd.f32 %v1432_v37, %v1428_v38 }
 0xe1a   :  { %2997 = vmatprep.mubr.msk.f32.mxu1 %vm180_vm2, %v1434_v56 }
 0xe1b   :  { %2998 = vmatmul.mubr.msk.f32.vlgmr.msra.gmra.mrb[16].mxu1 %vm180_vm2, %v1435_v39 }
 0xe1c   :  { %3002 = vmatprep.mubr.msk.f32.mxu1 %vm3298_vm3, %v3297_v53 }
 0xeee   :  { %v2999_v41 = vpop.f32.mrb[16].mxu1 }
 0xeef   :  { %v3564_v42 = vadd.f32 %v2999_v41, %v3561_v40  ;;  %v1517_v43 = vpop.f32.mrb[17].mxu1 }
 0xef0   :  { %v3567_v44 = vadd.f32 %v3561_v40, %v1517_v43 }
 0xef1   :  { %1604 = vrot.lane.b32.xlu1 %v3564_v42, %s3296_s1 }
 0xef2   :  { %1527 = vrot.lane.b32.xlu0 %v3567_v44, %s3296_s1 }
 0xf63   :  { %v1605_v46 = vpop.permute.xlu1 %1604 }
 0xf64   :  { %v1528_v45 = vpop.permute.xlu0 %1527 }
 0xf65   :  { %3001 = vmatpush3.xpose.msk.msra.mxu1 %vm313_vm9, %v1528_v45 }
 0xf66   :  { %3005 = vmatprep.subr.mxu1 %v3297_v53 }
 0xf68   :  { %3003 = vmatmul.mubr.msk.f32.vlgmr.msra.gmra.mrb[18].mxu1 %vm313_vm9, %v3567_v44 }
 0xf69   :  { %3006 = vmatpush3.xpose.msk.msra.mxu1 %vm313_vm9, %v1605_v46  ;;  %3007 = vmatprep.mubr.msk.f32.mxu1 %vm3298_vm3, %v3297_v53 }
 0xf6a   :  { %3015 = vmatprep.subr.mxu1 %v3297_v53 }
 0xf6c   :  { %3008 = vmatmul.mubr.msk.f32.vlgmr.msra.gmra.mrb[20].mxu1 %vm313_vm9, %v3564_v42 }
 0xf6d   :  { %3017 = vmatprep.mubr.msk.f32.mxu1 %vm3298_vm3, %v3297_v53 }
0x103b   :  { %v1599_v47 = vpop.f32.mrb[18].mxu1 }
0x103c   :  { %v1600_v48 = vadd.f32 %v1599_v47, %v3427_v23  ;;  %v3004_v49 = vpop.f32.mrb[19].mxu1 }
0x103d   :  { %v3202_v49 = vpack.i.bf16 %v3544_v31, %v3542_v21 }
0x103e   :  { %v1680_v50 = vsel %vm465_vm15, %v1600_v48, -inf }
0x103f   :  { %1681 = vmax.xlane.f32.xlu1 %v1680_v50  ;;  %v1676_v51 = vpop.f32.mrb[20].mxu1 }
0x1040   :  { %v1677_v55 = vadd.f32 %v1676_v51, %v3430_v27  ;;  %v3009_v57 = vpop.f32.mrb[21].mxu1 }
0x1042   :  { %v1683_v58 = vsel %vm465_vm15, %v1677_v55, -inf }
0x1043   :  { %1684 = vmax.xlane.f32.xlu0 %v1683_v58 }
0x1050   :  { %1778 = vrot.lane.b32.xlu1 %v3564_v42, %s3300_s0 }
0x1054   :  { %1858 = vrot.lane.b32.xlu1 %v3567_v44, %s3302_s29 }
0x1059   :  { %1702 = vrot.lane.b32.xlu0 %v3567_v44, %s3300_s0 }
0x10cc   :  { %v1682_v18 = vpop.xlane.xlu1 %1681 }
0x10cd   :  { %v1686_v59 = vsub.f32 %v1600_v48, %v1682_v18 }
0x10cf   :  { %v1688_v60 = vmul.f32 1.442695, %v1686_v59 }
0x10d0   :  { %v1779_v17 = vpop.permute.xlu1 %1778  ;;  %v1685_v63 = vpop.xlane.xlu0 %1684 }
0x10d1   :  { %3239 = vpow2.f32 %v1688_v60  ;;  %v1687_v1 = vsub.f32 %v1677_v55, %v1685_v63  ;;  %3016 = vmatpush3.msra.mxu1 %v1779_v17 }
0x10d2   :  { %3025 = vmatprep.subr.mxu1 %v3297_v53 }
0x10d3   :  { %v1690_v2 = vmul.f32 1.442695, %v1687_v1 }
0x10d4   :  { %v1703_v6 = vpop.permute.xlu0 %1702  ;;  %v1859_v13 = vpop.permute.xlu1 %1858 }
0x10d5   :  { %3241 = vpow2.f32 %v1690_v2  ;;  %3011 = vmatpush3.msra.mxu0 %v1703_v6 }
0x10d6   :  { %3020 = vmatprep.subr.mxu0 %v3297_v53 }
0x10db   :  { %v3240_v9 = vpop.eup %3239 }
0x10dc   :  { %v1692_v11 = vsel %vm465_vm15, %v3240_v9, 0.0 }
0x10dd   :  { %1693 = vadd.xlane.f32.xlu0 %v1692_v11 }
0x10df   :  { %v3242_v12 = vpop.eup %3241 }
0x10e0   :  { %v1695_v52 = vsel %vm465_vm15, %v3242_v12, 0.0 }
0x10e1   :  { %1696 = vadd.xlane.f32.xlu1 %v1695_v52 }
0x10f2   :  { %1856 = vrot.lane.b32.xlu1 %v3567_v44, %s3303_s30 }
0x10f3   :  { %1936 = vrot.lane.b32.xlu0 %v3564_v42, %s3302_s29 }
0x10f7   :  { %1934 = vrot.lane.b32.xlu0 %v3564_v42, %s3303_s30 }
0x116a   :  { %v1694_v54 = vpop.xlane.xlu0 %1693 }
0x116b   :  { %3243 = vrcp.f32 %v1694_v54 }
0x116e   :  { %v1697_v14 = vpop.xlane.xlu1 %1696  ;;  %v1937_v20 = vpop.permute.xlu0 %1936 }
0x116f   :  { %3245 = vrcp.f32 %v1697_v14 }
0x1172   :  { %v1857_v26 = vpop.permute.xlu1 %1856  ;;  %v1935_v28 = vpop.permute.xlu0 %1934 }
0x1175   :  { %v3244_v15 = vpop.eup %3243 }
0x1176   :  { %v1700_v16 = vmul.f32 %v3244_v15, %v3240_v9 }
0x1178   :  { %3013 = vmatmul.mubr.msk.f32.vlgmr.msra.gmra.mrb[10].mxu0 %vm465_vm15, %v1700_v16 }
0x1179   :  { %v3246_v19 = vpop.eup %3245  ;;  %3021 = vmatpush3.xpose.msk.msra.mxu0 %vm313_vm9, %v1859_v13  ;;  %3022 = vmatprep.mubr.msk.f32.mxu0 %vm3298_vm3, %v3297_v53 }
0x117a   :  { %v1701_v22 = vmul.f32 %v3246_v19, %v3242_v12  ;;  %3030 = vmatprep.subr.mxu0 %v3297_v53 }
0x117c   :  { %3018 = vmatmul.mubr.msk.f32.vlgmr.msra.gmra.mrb[22].mxu1 %vm465_vm15, %v1701_v22  ;;  %3023 = vmatmul.mubr.msk.f32.vlgmr.msra.gmra.mrb[12].mxu0 %vm313_vm9, %v1857_v26 }
0x117d   :  { %3026 = vmatpush3.xpose.msk.msra.mxu1 %vm313_vm9, %v1937_v20  ;;  %3027 = vmatprep.mubr.msk.f32.mxu1 %vm3298_vm3, %v3297_v53 }
0x117e   :  { %3035 = vmatprep.subr.mxu1 %v3297_v53  ;;  %3032 = vmatprep.mubr.msk.f32.mxu0 %vm3298_vm3, %v3297_v53 }
0x1180   :  { %3028 = vmatmul.mubr.msk.f32.vlgmr.msra.gmra.mrb[24].mxu1 %vm313_vm9, %v1935_v28 }
0x1181   :  { %3037 = vmatprep.mubr.msk.f32.mxu1 %vm3298_vm3, %v3297_v53 }
0x124b   :  { %v3621_v29 = vpop.f32.mrb[10].mxu0 }
0x124c   :  { %v3014_v10 = vpop.f32.mrb[11].mxu0 }
0x124f   :  { %v3623_v62 = vpop.f32.mrb[22].mxu1  ;;  %v1930_v30 = vpop.f32.mrb[12].mxu0 }
0x1250   :  { %v1931_v3 = vadd.f32 %v1930_v30, %v3427_v23  ;;  %v3019_v35 = vpop.f32.mrb[23].mxu1  ;;  %v3024_v36 = vpop.f32.mrb[13].mxu0  ;;  %v2415_v30 = vld [vmem:[#allocation2 + $0x60] sm:$0xff] }
0x1251   :  { %v2417_v36 = vld [vmem:[#allocation2 + $0x70] sm:$0xff] }
0x1252   :  { %v2012_v32 = vsel %vm465_vm15, %v1931_v3, -inf }
0x1253   :  { %2013 = vmax.xlane.f32.xlu1 %v2012_v32  ;;  %v2008_v33 = vpop.f32.mrb[24].mxu1  ;;  %v2418_v32 = vld [vmem:[#allocation2 + $0x78] sm:$0xff] }
0x1254   :  { %v2009_v34 = vadd.f32 %v2008_v33, %v3430_v27  ;;  %v3029_v37 = vpop.f32.mrb[25].mxu1  ;;  %v3197_v27 = vpack.i.bf16 %v3550_v25, %v3548_v24  ;;  %v3147_v33 = vpack.c.bf16 %v2418_v32, %v2417_v36 }
0x1256   :  { %v2015_v38 = vsel %vm465_vm15, %v2009_v34, -inf }
0x1257   :  { %2016 = vmax.xlane.f32.xlu0 %v2015_v38 }
0x12e0   :  { %v2014_v53 = vpop.xlane.xlu1 %2013 }
0x12e1   :  { %v2018_v56 = vsub.f32 %v1931_v3, %v2014_v53  ;;  %v2416_v3 = vld [vmem:[#allocation2 + $0x68] sm:$0xff] }
0x12e2   :  { %v3143_v35 = vpack.c.bf16 %v2416_v3, %v2415_v30 }
0x12e3   :  { %v2020_v39 = vmul.f32 1.442695, %v2018_v56 }
0x12e4   :  { %v2017_v41 = vpop.xlane.xlu0 %2016 }
0x12e5   :  { %3247 = vpow2.f32 %v2020_v39  ;;  %v2019_v43 = vsub.f32 %v2009_v34, %v2017_v41 }
0x12e7   :  { %v2022_v45 = vmul.f32 1.442695, %v2019_v43 }
0x12e9   :  { %3249 = vpow2.f32 %v2022_v45 }
0x12ef   :  { %v3248_v23 = vpop.eup %3247 }
0x12f0   :  { %v2024_v46 = vsel %vm465_vm15, %v3248_v23, 0.0 }
0x12f1   :  { %2025 = vadd.xlane.f32.xlu0 %v2024_v46 }
0x12f3   :  { %v3250_v47 = vpop.eup %3249 }
0x12f4   :  { %v2027_v48 = vsel %vm465_vm15, %v3250_v47, 0.0 }
0x12f5   :  { %2028 = vadd.xlane.f32.xlu1 %v2027_v48 }
0x1306   :  { %2110 = vrot.lane.b32.xlu1 %v3564_v42, %s3304_s3 }
0x1307   :  { %2034 = vrot.lane.b32.xlu0 %v3567_v44, %s3304_s3 }
0x130a   :  { %3198 = vrot.lane.b32.xlu1 %v3197_v27, %s3305_s4 }
0x130b   :  { %3203 = vrot.lane.b32.xlu0 %v3202_v49, %s3305_s4 }
0x130e   :  { %2374 = vrot.lane.b32.xlu1 %v3561_v40, %s3305_s4 }
0x137e   :  { %v2026_v50 = vpop.xlane.xlu0 %2025 }
0x137f   :  { %3251 = vrcp.f32 %v2026_v50  ;;  %v2523_v50 = vld [vmem:[#allocation2 + $0xa0] sm:$0xff] }
0x1382   :  { %v2029_v51 = vpop.xlane.xlu1 %2028  ;;  %v2035_v42 = vpop.permute.xlu0 %2034 }
0x1383   :  { %3253 = vrcp.f32 %v2029_v51  ;;  %3031 = vmatpush3.msra.mxu0 %v2035_v42  ;;  %v2524_v51 = vld [vmem:[#allocation2 + $0xa8] sm:$0xff]  ;;  %v2525_v42 = vld [vmem:[#allocation2 + $0xb0] sm:$0xff] }
0x1386   :  { %v2111_v44 = vpop.permute.xlu1 %2110  ;;  %v3204_v55 = vpop.permute.xlu0 %3203 }
0x1387   :  { %3036 = vmatpush3.msra.mxu1 %v2111_v44  ;;  %v3206_v25 = vunpack.i.h.bf16 %v3204_v55  ;;  %v3205_v57 = vunpack.i.l.bf16 %v3204_v55  ;;  %v3151_v44 = vpack.c.bf16 %v2524_v51, %v2523_v50  ;;  %v2526_v55 = vld [vmem:[#allocation2 + $0xb8] sm:$0xff] }
0x1388   :  { %3144 = vmatprep.subr.bf16.mxu1 %v3143_v35 }
0x1389   :  { %v3252_v24 = vpop.eup %3251  ;;  %v3139_v60 = vpack.c.bf16 %v3206_v25, %v3205_v57  ;;  %v2789_v25 = vld [vmem:[#allocation2 + $0xed] ss:$0 sm:$0xff] }
0x138a   :  { %v2032_v21 = vmul.f32 %v3252_v24, %v3248_v23  ;;  %v3199_v31 = vpop.permute.xlu1 %3198  ;;  %v3155_v24 = vpack.c.bf16 %v2526_v55, %v2525_v42 }
0x138b   :  { %v3201_v58 = vunpack.i.h.bf16 %v3199_v31  ;;  %v3200_v18 = vunpack.i.l.bf16 %v3199_v31 }
0x138c   :  { %3033 = vmatmul.mubr.msk.f32.vlgmr.msra.gmra.mrb[14].mxu0 %vm465_vm15, %v2032_v21 }
0x138d   :  { %v3254_v59 = vpop.eup %3253  ;;  %v3135_v40 = vpack.c.bf16 %v3201_v58, %v3200_v18 }
0x138e   :  { %v2033_v17 = vmul.f32 %v3254_v59, %v3250_v47  ;;  %v2375_v11 = vpop.permute.xlu1 %2374 }
0x138f   :  { %3136 = vmatprep.subr.bf16.mxu0 %v3135_v40 }
0x1390   :  { %3038 = vmatmul.mubr.msk.f32.vlgmr.msra.gmra.mrb[26].mxu1 %vm465_vm15, %v2033_v17  ;;  %3138 = vmatpush3.bf16.msra.mxu0 %v3135_v40 }
0x1391   :  { %3140 = vmatprep.subr.bf16.mxu0 %v3139_v60  ;;  %3146 = vmatpush3.bf16.msra.mxu1 %v3143_v35 }
0x1392   :  { %3148 = vmatprep.subr.bf16.mxu1 %v3147_v33 }
0x1395   :  { %3150 = vmatpush3.bf16.msra.mxu1 %v3147_v33 }
0x1396   :  { %3160 = vmatprep.subr.bf16.mxu1 %v3340_v7 }
0x145f   :  { %v2106_v63 = vpop.f32.mrb[14].mxu0 }
0x1460   :  { %v3034_v1 = vpop.f32.mrb[15].mxu0  ;;  %3044 = vmatprep.mubr.msk.f32.mxu0 %vm313_vm9, %v2106_v63 }
0x1463   :  { %v2182_v2 = vpop.f32.mrb[26].mxu1 }
0x1464   :  { %v3039_v6 = vpop.f32.mrb[27].mxu1  ;;  %3045 = vmatmul.mubr.msk.f32.vlgmr.msra.gmra.mrb[16].mxu0 %vm313_vm9, %v2182_v2 }
0x1465   :  { %3142 = vmatpush3.bf16.msra.mxu0 %v3139_v60  ;;  %3051 = vmatprep.mubr.msk.f32.mxu0 %vm313_vm9, %v3621_v29 }
0x1466   :  { %3152 = vmatprep.subr.bf16.mxu0 %v3151_v44 }
0x146c   :  { %3052 = vmatmul.mubr.msk.f32.vlgmr.msra.gmra.mrb[16].mxu0 %vm313_vm9, %v3623_v62 }
0x146e   :  { %3154 = vmatpush3.bf16.xpose.msra.mxu0 %v3151_v44 }
0x146f   :  { %3156 = vmatprep.subr.bf16.mxu0 %v3155_v24 }
0x1476   :  { %3158 = vmatpush3.bf16.xpose.msra.mxu0 %v3155_v24 }
0x153f   :  { %v3053_v9 = vpop.f32.mrb[16].mxu0 }
0x1540   :  { %v2367_v12 = vadd.f32 %v3053_v9, %v3525_v4  ;;  %v2357_v52 = vpop.f32.mrb[17].mxu0 }
0x1541   :  { %v2366_v13 = vadd.f32 %v2357_v52, %v3528_v5 }
0x1542   :  { %v3653_v54 = vadd.f32 %v2375_v11, %v2367_v12 }
0x1543   :  { %v3655_v14 = vadd.f32 %v2375_v11, %v2366_v13 }
0x1544   :  { %v2382_v15 = vsel %vm180_vm2, %v3653_v54, 0.0 }
0x1545   :  { %2383 = vadd.xlane.f32.xlu1 %v2382_v15  ;;  %v2379_v16 = vsel %vm180_vm2, %v3655_v14, 0.0 }
0x1546   :  { %2380 = vadd.xlane.f32.xlu0 %v2379_v16 }
0x1556   :  { %2405 = vrot.lane.b32.xlu1 %v3538_v0, %s3300_s0 }
0x155a   :  { %2610 = vrot.lane.b32.xlu1 %v3520_v61, %s3296_s1 }
0x15d2   :  { %v2384_v4 = vpop.xlane.xlu1 %2383 }
0x15d3   :  { %v2386_v5 = vmul.f32 0.03125, %v2384_v4  ;;  %v2381_v19 = vpop.xlane.xlu0 %2380 }
0x15d4   :  { %v2385_v20 = vmul.f32 0.03125, %v2381_v19 }
0x15d5   :  { %v2388_v22 = vsub.f32 %v3653_v54, %v2386_v5 }
0x15d6   :  { %v2387_v26 = vsub.f32 %v3655_v14, %v2385_v20  ;;  %v2406_v41 = vpop.permute.xlu1 %2405 }
0x15d7   :  { %v2390_v10 = vmul.f32 %v2388_v22, %v2388_v22 }
0x15d8   :  { %v2389_v28 = vmul.f32 %v2387_v26, %v2387_v26 }
0x15d9   :  { %v2394_v62 = vsel %vm180_vm2, %v2390_v10, 0.0 }
0x15da   :  { %v2391_v29 = vsel %vm180_vm2, %v2389_v28, 0.0  ;;  %v2611_v5 = vpop.permute.xlu1 %2610 }
0x15db   :  { %2392 = vadd.xlane.f32.xlu0 %v2391_v29 }
0x15df   :  { %2395 = vadd.xlane.f32.xlu0 %v2394_v62 }
0x15f5   :  { %2410 = vrot.lane.b32.xlu0 %v3538_v0, %s3305_s4 }
0x1668   :  { %v2393_v34 = vpop.xlane.xlu0 %2392 }
0x1669   :  { %v2397_v37 = vmul.f32 0.03125, %v2393_v34 }
0x166b   :  { %v2399_v38 = vadd.f32 1e-05, %v2397_v37 }
0x166c   :  { %v2396_v53 = vpop.xlane.xlu0 %2395 }
0x166d   :  { %3255 = vrsqrt.f32 %v2399_v38  ;;  %v2398_v56 = vmul.f32 0.03125, %v2396_v53 }
0x166f   :  { %v2400_v39 = vadd.f32 1e-05, %v2398_v56 }
0x1670   :  { %v2411_v45 = vpop.permute.xlu0 %2410 }
0x1671   :  { %3257 = vrsqrt.f32 %v2400_v39 }
0x1677   :  { %v3256_v0 = vpop.eup %3255 }
0x1678   :  { %v2403_v43 = vmul.f32 %v3256_v0, %v2387_v26 }
0x167a   :  { %v2408_v23 = vmul.f32 %v2406_v41, %v2403_v43 }
0x167b   :  { %v3258_v46 = vpop.eup %3257 }
0x167c   :  { %v2404_v47 = vmul.f32 %v3258_v46, %v2388_v22  ;;  %v2413_v48 = vadd.f32 %v2411_v45, %v2408_v23 }
0x167e   :  { %v2409_v27 = vmul.f32 %v2406_v41, %v2404_v47  ;;  %3062 = vmatprep.mubr.msk.f32.mxu1 %vm180_vm2, %v2413_v48 }
0x1680   :  { %v2414_v49 = vadd.f32 %v2411_v45, %v2409_v27 }
0x1682   :  { %3063 = vmatmul.mubr.msk.f32.vlgmr.msra.gmra.mrb[28].mxu1 %vm180_vm2, %v2414_v49 }
0x1683   :  { %3162 = vmatpush3.bf16.msra.mxu1 %v3340_v7 }
0x1684   :  { %3164 = vmatprep.subr.bf16.mxu1 %v3342_v8 }
0x1687   :  { %3166 = vmatpush3.bf16.msra.mxu1 %v3342_v8 }
0x1755   :  { %v3064_v57 = vpop.f32.mrb[28].mxu1 }
0x1756   :  { %v2502_v21 = vadd.f32 %v3064_v57, %v2789_v25  ;;  %v2496_v31 = vpop.f32.mrb[29].mxu1 }
0x1757   :  { %v2497_v58 = vadd.f32 %v2789_v25, %v2496_v31 }
0x1758   :  { %v2508_v7 = vmul.f32 0.044715, %v2502_v21  ;;  %v2506_v13 = vmul.f32 0.5, %v2502_v21 }
0x1759   :  { %v2507_v18 = vmul.f32 0.044715, %v2497_v58  ;;  %v2505_v12 = vmul.f32 0.5, %v2497_v58 }
0x175a   :  { %v2510_v59 = vmul.f32 %v2508_v7, %v2502_v21 }
0x175b   :  { %v2509_v40 = vmul.f32 %v2507_v18, %v2497_v58 }
0x175c   :  { %v2512_v8 = vmul.f32 %v2510_v59, %v2502_v21 }
0x175d   :  { %v2511_v60 = vmul.f32 %v2509_v40, %v2497_v58 }
0x175e   :  { %v2514_v17 = vadd.f32 %v2512_v8, %v2502_v21 }
0x175f   :  { %v2513_v63 = vadd.f32 %v2511_v60, %v2497_v58 }
0x1760   :  { %v2516_v1 = vmul.f32 0.7978846, %v2514_v17 }
0x1761   :  { %v2515_v2 = vmul.f32 0.7978846, %v2513_v63 }
0x1762   :  { %3259 = vtanh.f32 %v2516_v1 }
0x1763   :  { %3261 = vtanh.f32 %v2515_v2 }
0x176c   :  { %v3260_v6 = vpop.eup %3259 }
0x176d   :  { %v3262_v9 = vpop.eup %3261  ;;  %v2520_v11 = vadd.f32 1.0, %v3260_v6 }
0x176e   :  { %v2519_v52 = vadd.f32 1.0, %v3262_v9 }
0x176f   :  { %v2522_v16 = vmul.f32 %v2520_v11, %v2506_v13 }
0x1770   :  { %v2521_v15 = vmul.f32 %v2519_v52, %v2505_v12 }
0x1772   :  { %3073 = vmatprep.mubr.f32.mxu0 %v2521_v15 }
0x1773   :  { %3074 = vmatmul.mubr.f32.vlgmr.msra.gmra.mrb[18].mxu0 %v2522_v16 }
0x1846   :  { %v3075_v4 = vpop.f32.mrb[18].mxu0 }
0x1847   :  { %v2603_v19 = vadd.f32 %v3075_v4, %v3653_v54  ;;  %v2593_v20 = vpop.f32.mrb[19].mxu0 }
0x1848   :  { %v2602_v22 = vadd.f32 %v2593_v20, %v3655_v14 }
0x1849   :  { %v2614_v26 = vadd.f32 %v2611_v5, %v2603_v19 }
0x184a   :  { %v2613_v28 = vadd.f32 %v2611_v5, %v2602_v22 }
0x184b   :  { %v2618_v29 = vsel %vm180_vm2, %v2614_v26, 0.0 }
0x184c   :  { %2619 = vadd.xlane.f32.xlu0 %v2618_v29  ;;  %v2615_v10 = vsel %vm180_vm2, %v2613_v28, 0.0 }
0x184d   :  { %2616 = vadd.xlane.f32.xlu1 %v2615_v10 }
0x18d9   :  { %v2620_v62 = vpop.xlane.xlu0 %2619 }
0x18da   :  { %v2622_v30 = vmul.f32 0.03125, %v2620_v62  ;;  %v2617_v3 = vpop.xlane.xlu1 %2616 }
0x18db   :  { %v2621_v35 = vmul.f32 0.03125, %v2617_v3 }
0x18dc   :  { %v2624_v36 = vsub.f32 %v2614_v26, %v2622_v30 }
0x18dd   :  { %v2623_v32 = vsub.f32 %v2613_v28, %v2621_v35 }
0x18de   :  { %v2626_v33 = vmul.f32 %v2624_v36, %v2624_v36 }
0x18df   :  { %v2625_v34 = vmul.f32 %v2623_v32, %v2623_v32 }
0x18e0   :  { %v2630_v54 = vsel %vm180_vm2, %v2626_v33, 0.0 }
0x18e1   :  { %2631 = vadd.xlane.f32.xlu1 %v2630_v54  ;;  %v2627_v14 = vsel %vm180_vm2, %v2625_v34, 0.0 }
0x18e2   :  { %2628 = vadd.xlane.f32.xlu0 %v2627_v14 }
0x18f2   :  { %2646 = vrot.lane.b32.xlu1 %v3520_v61, %s3305_s4 }
0x18f8   :  { %2641 = vrot.lane.b32.xlu0 %v3520_v61, %s3300_s0 }
0x196e   :  { %v2632_v37 = vpop.xlane.xlu1 %2631 }
0x196f   :  { %v2634_v38 = vmul.f32 0.03125, %v2632_v37  ;;  %v2629_v53 = vpop.xlane.xlu0 %2628 }
0x1970   :  { %v2633_v56 = vmul.f32 0.03125, %v2629_v53 }
0x1971   :  { %v2636_v39 = vadd.f32 1e-05, %v2634_v38 }
0x1972   :  { %v2635_v0 = vadd.f32 1e-05, %v2633_v56  ;;  %v2647_v48 = vpop.permute.xlu1 %2646 }
0x1973   :  { %3263 = vrsqrt.f32 %v2636_v39  ;;  %v2642_v43 = vpop.permute.xlu0 %2641 }
0x1974   :  { %3265 = vrsqrt.f32 %v2635_v0 }
0x197d   :  { %v3264_v41 = vpop.eup %3263 }
0x197e   :  { %v3266_v45 = vpop.eup %3265  ;;  %v2640_v23 = vmul.f32 %v3264_v41, %v2624_v36 }
0x197f   :  { %v2639_v46 = vmul.f32 %v3266_v45, %v2623_v32 }
0x1980   :  { %v2645_v47 = vmul.f32 %v2642_v43, %v2640_v23 }
0x1981   :  { %v2644_v27 = vmul.f32 %v2642_v43, %v2639_v46 }
0x1982   :  { %v2650_v50 = vadd.f32 %v2647_v48, %v2645_v47 }
0x1983   :  { %v2649_v49 = vadd.f32 %v2647_v48, %v2644_v27 }
0x1985   :  { %3084 = vmatprep.mubr.msk.f32.mxu1 %vm180_vm2, %v2649_v49 }
0x1986   :  { %3085 = vmatmul.mubr.msk.f32.vlgmr.msra.gmra.mrb[30].mxu1 %vm180_vm2, %v2650_v50 }
0x1a59   :  { %v3086_v61 = vpop.f32.mrb[30].mxu1 }
0x1a5a   :  { %2733 = vst [vmem:[%s3697_s2 + $0x8] sm:$0xff] %v3086_v61  ;;  %v2723_v51 = vpop.f32.mrb[31].mxu1 }
0x1a5b   :  { %2732 = vst [vmem:[%s3697_s2] sm:$0xff] %v2723_v51 }
0x1a5c   :  { %2738 = vsyncpa [#allocation3], 1 }

</bundles_post_ra>
